<compile_context>
chip_gen: v6e
topology: v6e:2x2x1
jax: 0.10.0
libtpu: 0.0.40
codegen_flags: <defaults>
</compile_context>

<pallas_src>
import functools

import jax
import jax.numpy as jnp
from jax import lax
from jax.experimental import pallas as pl
from jax.experimental.pallas import tpu as pltpu


F32 = jnp.float32
BF16 = jnp.bfloat16


def _bf(x):
    return x.astype(BF16)


# ----------------------------------------------------------------------------
# pallas_call helper (single whole-array block; everything fits VMEM here)
# ----------------------------------------------------------------------------

def _whole(shape):
    nd = len(shape)
    return pl.BlockSpec(shape, lambda i, _nd=nd: (0,) * _nd)


def _pcall(kernel, out_shape, *inputs):
    multi = isinstance(out_shape, (tuple, list))
    shapes = tuple(out_shape) if multi else (out_shape,)
    out_specs = tuple(_whole(s.shape) for s in shapes)
    return pl.pallas_call(
        kernel,
        grid=(1,),
        in_specs=[_whole(x.shape) for x in inputs],
        out_specs=out_specs if multi else out_specs[0],
        out_shape=tuple(shapes) if multi else shapes[0],
        compiler_params=pltpu.CompilerParams(dimension_semantics=("arbitrary",)),
    )(*inputs)


# ----------------------------------------------------------------------------
# Pallas kernels
# ----------------------------------------------------------------------------

def _linear_kernel(x_ref, w_ref, b_ref, o_ref, *, act):
    y = jnp.dot(_bf(x_ref[...]), _bf(w_ref[...]),
                preferred_element_type=F32) + b_ref[...]
    if act == "relu":
        y = jnp.maximum(y, 0.0)
    o_ref[...] = y


def linear(x, w, b, act="none"):
    return _pcall(functools.partial(_linear_kernel, act=act),
                  jax.ShapeDtypeStruct((x.shape[0], w.shape[1]), F32), x, w, b)


def _edge_net_kernel(ea_ref, w1_ref, b1_ref, w2_ref, b2_ref, o_ref):
    # NNConv edge network: Linear -> ReLU -> Linear (runs ONCE per reactant).
    h1 = jnp.dot(_bf(ea_ref[...]), _bf(w1_ref[...]),
                 preferred_element_type=F32) + b1_ref[...]
    h1 = jnp.maximum(h1, 0.0)
    wf = jnp.dot(_bf(h1), _bf(w2_ref[...]),
                 preferred_element_type=F32) + b2_ref[...]
    o_ref[...] = wf.astype(o_ref.dtype)


def edge_net(ea, cp):
    e = ea.shape[0]
    hh = cp["en_w2"].shape[1]
    # wf only feeds the per-edge bilinear message -> store in bf16 (halves the
    # dominant [E, H*H] HBM/VMEM stream).
    return _pcall(_edge_net_kernel, jax.ShapeDtypeStruct((e, hh), BF16),
                  ea, cp["en_w1"], cp["en_b1"], cp["en_w2"], cp["en_b2"])


def _mpnn_kernel(x_ref, h_ref, gsrc_ref, sdst_ref, wf_ref,
                 rootw_ref, rootb_ref,
                 wir_ref, whr_ref, br_ref,
                 wiz_ref, whz_ref, bz_ref,
                 win_ref, bin_ref, whn_ref, bhn_ref,
                 o_ref, *, H, steps):
    """`steps` fused NNConv(mean)+ReLU+GRU steps for one reactant.

    Weights / wf / gather matrices are DMA'd once and stay VMEM-resident
    across all steps.
    """
    x = x_ref[...]                # [N, H] f32
    h = h_ref[...]                # [N, H] f32
    gsrc = gsrc_ref[...]          # [E, N] bf16 one-hot src gather
    sdst = sdst_ref[...]          # [N, E] bf16 degree-normalised dst scatter (mean aggr)
    wf = wf_ref[...]              # [E, H*H] bf16, PyTorch layout col = i*H + o
    rootw = _bf(rootw_ref[...])
    rootb = rootb_ref[...]
    wir, whr, br = _bf(wir_ref[...]), _bf(whr_ref[...]), br_ref[...]
    wiz, whz, bz = _bf(wiz_ref[...]), _bf(whz_ref[...]), bz_ref[...]
    win, b_in = _bf(win_ref[...]), bin_ref[...]
    whn, b_hn = _bf(whn_ref[...]), bhn_ref[...]
    E = wf.shape[0]

    for _ in range(steps):
        xb = _bf(x)
        # --- NNConv message: msg[e, o] = sum_i x[src[e], i] * wf[e, i*H + o] ---
        xj = jnp.dot(gsrc, xb, preferred_element_type=F32)               # [E, H]
        msg = jnp.zeros((E, H), F32)
        for i in range(H):   # no [E,H*H] replicate matmul, no 3-D intermediate
            msg = msg + xj[:, i:i + 1] * wf[:, i * H:(i + 1) * H]
        # --- mean aggregation + root transform + ReLU ---
        agg = jnp.dot(sdst, _bf(msg), preferred_element_type=F32)        # [N, H]
        root = jnp.dot(xb, rootw, preferred_element_type=F32) + rootb
        m = jnp.maximum(agg + root, 0.0)
        # --- GRU cell, per-gate weights (lane-aligned, no gate slicing) ---
        mb, hb = _bf(m), _bf(h)
        r = jax.nn.sigmoid(jnp.dot(mb, wir, preferred_element_type=F32)
                           + jnp.dot(hb, whr, preferred_element_type=F32) + br)
        z = jax.nn.sigmoid(jnp.dot(mb, wiz, preferred_element_type=F32)
                           + jnp.dot(hb, whz, preferred_element_type=F32) + bz)
        n = jnp.tanh(jnp.dot(mb, win, preferred_element_type=F32) + b_in
                     + r * (jnp.dot(hb, whn, preferred_element_type=F32) + b_hn))
        h = (1.0 - z) * n + z * h
        x = h
    o_ref[...] = h


def mpnn_steps(x, h, gsrc, sdst_mean, wf, params, steps):
    n, hd = x.shape
    cv, gr = params["conv"], params["gru"]
    return _pcall(functools.partial(_mpnn_kernel, H=hd, steps=steps),
                  jax.ShapeDtypeStruct((n, hd), F32),
                  x, h, gsrc, sdst_mean, wf,
                  cv["root_w"], cv["root_b"],
                  gr["wir"], gr["whr"], gr["br"],
                  gr["wiz"], gr["whz"], gr["bz"],
                  gr["win"], gr["bin"], gr["whn"], gr["bhn"])


def _gatv2_kernel(xs_ref, xd_ref, gsrc_ref, gdst_ref, sdst_ref,
                  hmask_ref, hs_ref,
                  wl_ref, bl_ref, wr_ref, br_ref, att_ref, bias_ref,
                  o_ref, *, heads):
    """GATv2Conv (bipartite, 2 heads, concat, no self loops, eval dropout)."""
    gsrc = gsrc_ref[...]          # [E, Ns] bf16
    gdst = gdst_ref[...]          # [E, Nd] bf16
    sdst = sdst_ref[...]          # [Nd, E] bf16 (unnormalised scatter-sum)
    xl = jnp.dot(_bf(xs_ref[...]), _bf(wl_ref[...]),
                 preferred_element_type=F32) + bl_ref[...]               # [Ns, C]
    xr = jnp.dot(_bf(xd_ref[...]), _bf(wr_ref[...]),
                 preferred_element_type=F32) + br_ref[...]               # [Nd, C]
    xj = jnp.dot(gsrc, _bf(xl), preferred_element_type=F32)              # [E, C]
    xi = jnp.dot(gdst, _bf(xr), preferred_element_type=F32)              # [E, C]
    s = xi + xj
    s = jnp.where(s > 0.0, s, 0.2 * s)                                   # leaky_relu(0.2)
    sa = s * att_ref[...]                                                # [E, C]
    # per-head logits via block-sum matmul (kept f32 for softmax fidelity)
    alpha = jnp.dot(sa, hs_ref[...], preferred_element_type=F32)         # [E, heads]
    gdst_f = gdst.astype(F32)
    w_lanes = jnp.zeros_like(xj)
    for hh in range(heads):                       # heads is small & static
        a_h = alpha[:, hh:hh + 1]                                            # [E, 1]
        masked = jnp.where(gdst > 0, a_h, -1e30)                             # [E, Nd]
        amax = jnp.max(masked, axis=0, keepdims=True)                        # [1, Nd]
        amax_e = jnp.sum(gdst_f * amax, axis=1, keepdims=True)               # [E, 1]
        p = jnp.exp(a_h - amax_e)                                            # [E, 1]
        psum = jnp.dot(sdst, p, preferred_element_type=F32)                  # [Nd, 1]
        den = jnp.dot(gdst, psum, preferred_element_type=F32)                # [E, 1]
        w_h = p * pl.reciprocal(den + 1e-16, approx=True)                    # [E, 1]
        w_lanes = w_lanes + hmask_ref[hh:hh + 1, :] * w_h                    # [E, C]
    msg = xj * w_lanes
    o_ref[...] = (jnp.dot(sdst, _bf(msg), preferred_element_type=F32)
                  + bias_ref[...])


def gatv2_conv(x_src, x_dst, gsrc, gdst, sdst, hmask, hs, pg, heads=2):
    nd = x_dst.shape[0]
    c = pg["wl"].shape[1]
    return _pcall(functools.partial(_gatv2_kernel, heads=heads),
                  jax.ShapeDtypeStruct((nd, c), F32),
                  x_src, x_dst, gsrc, gdst, sdst, hmask, hs,
                  pg["wl"], pg["bl"], pg["wr"], pg["br"], pg["att"], pg["bias"])


def _readout_kernel(x_ref, m_ref, mt_ref, invc_ref,
                    gnw_ref, gnb_ref, gnm_ref,
                    wqi_ref, wri_ref, whi_ref, bi_ref,
                    wqf_ref, wrf_ref, whf_ref, bff_ref,
                    wqg_ref, wrg_ref, whg_ref, bgg_ref,
                    wqo_ref, wro_ref, who_ref, boo_ref,
                    mm_ref, qr_ref, *, H, steps):
    """GraphNorm + scatter max/mean + 3-step Set2Set, fused for one reactant.

    Outputs are lane-dense: mm = [smax | smean] (B, 2H), qr = [q | r] (B, 2H).
    """
    x = x_ref[...]                       # [N, H]
    M = m_ref[...]                       # [B, N] bf16 one-hot graph membership
    MT = mt_ref[...]                     # [N, B] bf16
    invc = invc_ref[...]                 # [B, 1]
    B = M.shape[0]
    mt_f = MT.astype(F32)
    # --- GraphNorm (eval): rsqrt on the EUP instead of divide ---
    mean = jnp.dot(M, x, preferred_element_type=F32) * invc                  # [B, H]
    out = x - jnp.dot(MT, mean, preferred_element_type=F32) * gnm_ref[...]   # [N, H]
    var = jnp.dot(M, out * out, preferred_element_type=F32) * invc           # [B, H]
    inv_std = lax.rsqrt(var + 1e-5)                                          # [B, H]
    xn = (gnw_ref[...] * out
          * jnp.dot(MT, inv_std, preferred_element_type=F32) + gnb_ref[...])
    # --- scatter mean / max (2-D only; no [B, N, H] intermediate) ---
    smean = jnp.dot(M, xn, preferred_element_type=F32) * invc                # [B, H]
    rows = []
    for g in range(B):
        pen = (mt_f[:, g:g + 1] - 1.0) * 1e30          # 0 in-graph, -1e30 else
        rows.append(jnp.max(xn + pen, axis=0, keepdims=True))                # [1, H]
    smax = jnp.concatenate(rows, axis=0)                                     # [B, H]
    mm_ref[...] = jnp.concatenate([smax, smean], axis=1)                     # [B, 2H]
    # --- Set2Set: per-gate LSTM (PyTorch order i,f,g,o, b_ih+b_hh folded)
    #     + segment-softmax attention (matmul segment sums + EUP reciprocal) ---
    wqi, wri, whi, bi = _bf(wqi_ref[...]), _bf(wri_ref[...]), _bf(whi_ref[...]), bi_ref[...]
    wqf, wrf, whf, bff = _bf(wqf_ref[...]), _bf(wrf_ref[...]), _bf(whf_ref[...]), bff_ref[...]
    wqg, wrg, whg, bgg = _bf(wqg_ref[...]), _bf(wrg_ref[...]), _bf(whg_ref[...]), bgg_ref[...]
    wqo, wro, who, boo = _bf(wqo_ref[...]), _bf(wro_ref[...]), _bf(who_ref[...]), boo_ref[...]
    h = jnp.zeros((B, H), F32)
    c = jnp.zeros((B, H), F32)
    q = jnp.zeros((B, H), F32)
    r = jnp.zeros((B, H), F32)
    for _ in range(steps):
        qb, rb, hb = _bf(q), _bf(r), _bf(h)

        def gate(wq, wr_, wh, b):
            return (jnp.dot(qb, wq, preferred_element_type=F32)
                    + jnp.dot(rb, wr_, preferred_element_type=F32)
                    + jnp.dot(hb, wh, preferred_element_type=F32) + b)

        i_g = jax.nn.sigmoid(gate(wqi, wri, whi, bi))
        f_g = jax.nn.sigmoid(gate(wqf, wrf, whf, bff))
        g_g = jnp.tanh(gate(wqg, wrg, whg, bgg))
        o_g = jax.nn.sigmoid(gate(wqo, wro, who, boo))
        c = f_g * c + i_g * g_g
        h = o_g * jnp.tanh(c)
        q = h
        qn = jnp.dot(MT, q, preferred_element_type=F32)                      # [N, H]
        e = jnp.sum(xn * qn, axis=1, keepdims=True)                          # [N, 1]
        emax = jnp.max(jnp.where(MT > 0, e, -1e30), axis=0, keepdims=True)   # [1, B]
        e_max_n = jnp.sum(mt_f * emax, axis=1, keepdims=True)                # [N, 1]
        p = jnp.exp(e - e_max_n)                                             # [N, 1]
        psum = jnp.dot(M, p, preferred_element_type=F32)                     # [B, 1]
        den = jnp.dot(MT, psum, preferred_element_type=F32)                  # [N, 1]
        a = p * pl.reciprocal(den + 1e-16, approx=True)                      # [N, 1]
        r = jnp.dot(M, a * xn, preferred_element_type=F32)                   # [B, H]
    qr_ref[...] = jnp.concatenate([q, r], axis=1)                            # [B, 2H]


def readout(x, mseg, msegT, invc, params):
    _, hd = x.shape
    bg = mseg.shape[0]
    gn, s2 = params["gn"], params["s2s"]
    return _pcall(functools.partial(_readout_kernel, H=hd, steps=3),
                  (jax.ShapeDtypeStruct((bg, 2 * hd), F32),
                   jax.ShapeDtypeStruct((bg, 2 * hd), F32)),
                  x, mseg, msegT, invc,
                  gn["weight"], gn["bias"], gn["mean_scale"],
                  s2["wq_i"], s2["wr_i"], s2["wh_i"], s2["b_i"],
                  s2["wq_f"], s2["wr_f"], s2["wh_f"], s2["b_f"],
                  s2["wq_g"], s2["wr_g"], s2["wh_g"], s2["b_g"],
                  s2["wq_o"], s2["wr_o"], s2["wh_o"], s2["b_o"])


def _head_kernel(x2_ref, x3_ref, x4_ref,
                 bw2_ref, bb2_ref, bw3_ref, bb3_ref, bw4_ref, bb4_ref,
                 ow1a_ref, ow1b_ref, ow1c_ref, ob1_ref,
                 ow2_ref, ob2_ref, ow3_ref, ob3_ref, o_ref, *, a1, a2):
    """3x BNLinear (BN folded, swish) + outblock (Linear/PReLU x2 + Linear)."""
    def swish_lin(x_ref, w_ref, b_ref):
        y = jnp.dot(_bf(x_ref[...]), _bf(w_ref[...]),
                    preferred_element_type=F32) + b_ref[...]
        return y * jax.nn.sigmoid(y)

    h2 = swish_lin(x2_ref, bw2_ref, bb2_ref)
    h3 = swish_lin(x3_ref, bw3_ref, bb3_ref)
    h4 = swish_lin(x4_ref, bw4_ref, bb4_ref)
    # concat([h2,h3,h4]) @ W1  ==  h2 @ W1a + h3 @ W1b + h4 @ W1c
    y = (jnp.dot(_bf(h2), _bf(ow1a_ref[...]), preferred_element_type=F32)
         + jnp.dot(_bf(h3), _bf(ow1b_ref[...]), preferred_element_type=F32)
         + jnp.dot(_bf(h4), _bf(ow1c_ref[...]), preferred_element_type=F32)
         + ob1_ref[...])
    y = jnp.where(y > 0.0, y, a1 * y)
    y = jnp.dot(_bf(y), _bf(ow2_ref[...]), preferred_element_type=F32) + ob2_ref[...]
    y = jnp.where(y > 0.0, y, a2 * y)
    o_ref[...] = jnp.dot(_bf(y), _bf(ow3_ref[...]),
                         preferred_element_type=F32) + ob3_ref[...]


def head_block(x2, x3, x4, params):
    ob = params["outblock"]
    bg = x2.shape[0]
    return _pcall(functools.partial(_head_kernel, a1=ob["a1"], a2=ob["a2"]),
                  jax.ShapeDtypeStruct((bg, 2), F32),
                  x2, x3, x4,
                  params["bn2_weff"], params["bn2_beff"],
                  params["bn3_weff"], params["bn3_beff"],
                  params["bn4_weff"], params["bn4_beff"],
                  ob["w1a"], ob["w1b"], ob["w1c"], ob["b1"],
                  ob["w2"], ob["b2"], ob["w3"], ob["b3"])


# ----------------------------------------------------------------------------
# Full forward pass
# ----------------------------------------------------------------------------

def reachgnn_forward(params, data, num_pre_mpnn=2, num_blocks=2):
    reactants = data["reactants"]
    B = data["num_graphs"]
    H = params["conv"]["root_w"].shape[0]

    # ---- one-time precompute per edge type (constant across all MPNN steps) ----
    bond = {}
    for nt in reactants:
        ei = data["edge_index"][(nt, "bond", nt)]
        ea = data["edge_attr"][(nt, "bond", nt)]
        n_nodes = data["x"][nt].shape[0]
        src, dst = ei[0], ei[1]
        gsrc = (src[:, None] == jnp.arange(n_nodes, dtype=src.dtype)[None, :]).astype(F32)
        dmask = (dst[None, :] == jnp.arange(n_nodes, dtype=dst.dtype)[:, None]).astype(F32)
        sdst_mean = dmask / jnp.maximum(jnp.sum(dmask, axis=1, keepdims=True), 1.0)
        wf = edge_net(ea, params["conv"])            # [E, H*H] bf16, computed once
        bond[nt] = (_bf(gsrc), _bf(sdst_mean), wf)

    inter_pre = {}
    for et in params["inter"]:
        s, _, d = et
        ei = data["edge_index"][et]
        ns = data["x"][s].shape[0]
        ndn = data["x"][d].shape[0]
        src, dst = ei[0], ei[1]
        gsrc = (src[:, None] == jnp.arange(ns, dtype=src.dtype)[None, :]).astype(F32)
        gdst = (dst[:, None] == jnp.arange(ndn, dtype=dst.dtype)[None, :]).astype(F32)
        inter_pre[et] = (_bf(gsrc), _bf(gdst), _bf(gdst.T))

    hmask = _bf(params["hmask"])          # [heads, C]
    hs = _bf(params["hmask"].T)           # [C, heads]

    # ---- per-reactant pre-MPNN (lin0 + fused NNConv/GRU step loop) ----
    x_dict, h_dict = {}, {}
    for nt in reactants:
        out0 = linear(data["x"][nt], params["lin0_w"], params["lin0_b"], act="relu")
        gsrc, sdst, wf = bond[nt]
        h = mpnn_steps(out0, out0, gsrc, sdst, wf, params, steps=num_pre_mpnn)
        x_dict[nt], h_dict[nt] = h, h

    # ---- hetero blocks: inter-type GATv2 (sum aggr) + shared NNConv/GRU ----
    for _ in range(num_blocks):
        x_new = {}
        for et, pg in params["inter"].items():
            s, _, d = et
            gsrc, gdst, sdst = inter_pre[et]
            v = gatv2_conv(x_dict[s], x_dict[d], gsrc, gdst, sdst, hmask, hs, pg)
            x_new[d] = x_new.get(d, 0.0) + v
        for k, v in x_new.items():
            x_dict[k] = x_dict[k] + v
        for nt in reactants:
            gsrc, sdst, wf = bond[nt]
            h = mpnn_steps(x_dict[nt], h_dict[nt], gsrc, sdst, wf, params, steps=1)
            x_dict[nt], h_dict[nt] = h, h

    # ---- readouts: GraphNorm + scatter max/mean + Set2Set (lane-dense outs) ----
    mm_list, qr_list = [], []
    for nt in reactants:
        bvec = data["batch"][nt]
        mseg = (jnp.arange(B, dtype=bvec.dtype)[:, None] == bvec[None, :]).astype(F32)
        invc = 1.0 / jnp.maximum(jnp.sum(mseg, axis=1, keepdims=True), 1.0)
        mm, qr = readout(x_dict[nt], _bf(mseg), _bf(mseg.T), invc, params)
        mm_list.append(mm)
        qr_list.append(qr)

    x2 = jnp.concatenate([mm[:, :H] for mm in mm_list], axis=1)   # scatter-max
    x3 = jnp.concatenate([mm[:, H:] for mm in mm_list], axis=1)   # scatter-mean
    x4 = jnp.concatenate(qr_list, axis=1)                         # Set2Set [q | r]
    out = head_block(x2, x3, x4, params)
    return out[:, 0:1], out[:, 1:2]


# ----------------------------------------------------------------------------
# Deterministic parameter / data construction
# ----------------------------------------------------------------------------

def init_params(key, x_in_dim, edge_in_dim, H, OH, reactants, inter_edges):
    keys = iter(jax.random.split(key, 64))

    def w(shape, scale=0.1):
        return (scale * jax.random.normal(next(keys), shape)).astype(F32)

    def zeros(shape):
        return jnp.zeros(shape, F32)

    def ones(shape):
        return jnp.ones(shape, F32)

    def bn_folded(in_dim, out_dim):
        # BNLinear in eval mode: swish(BN(Linear(x))) with BN folded into W, b.
        w_ = w((in_dim, out_dim))
        b_ = zeros((out_dim,))
        gamma, beta = ones((out_dim,)), zeros((out_dim,))
        rm, rv = zeros((out_dim,)), ones((out_dim,))
        s = gamma / jnp.sqrt(rv + 1e-5)
        return w_ * s[None, :], ((b_ - rm) * s + beta).reshape(1, out_dim)

    NR = len(reactants)
    heads, oc = 2, H // 2
    C = heads * oc

    params = {
        "lin0_w": w((x_in_dim, H)), "lin0_b": zeros((1, H)),
        "conv": {
            "en_w1": w((edge_in_dim, 2 * H)), "en_b1": zeros((1, 2 * H)),
            # column layout i*H + o  (PyTorch NNConv .view(in, out))
            "en_w2": w((2 * H, H * H), 0.02), "en_b2": zeros((1, H * H)),
            "root_w": w((H, H)), "root_b": zeros((1, H)),
        },
        # GRU with per-gate weights; b_r/b_z fold b_ih+b_hh, b_in/b_hn stay
        # separate because PyTorch applies the reset gate inside the b_hn term.
        "gru": {"wir": w((H, H)), "wiz": w((H, H)), "win": w((H, H)),
                "whr": w((H, H)), "whz": w((H, H)), "whn": w((H, H)),
                "br": zeros((1, H)), "bz": zeros((1, H)),
                "bin": zeros((1, H)), "bhn": zeros((1, H))},
        "gn": {"weight": ones((1, H)), "bias": zeros((1, H)), "mean_scale": ones((1, H))},
        # Set2Set LSTM per-gate weights (q half / r half of q_star, hidden),
        # bias = b_ih + b_hh folded.
        "s2s": {},
        "inter": {},
        "outblock": {"w1a": w((OH, OH)), "w1b": w((OH, OH)), "w1c": w((OH, OH)),
                     "b1": zeros((1, OH)), "a1": 0.25,
                     "w2": w((OH, OH)), "b2": zeros((1, OH)), "a2": 0.25,
                     "w3": w((OH, 2)), "b3": zeros((1, 2))},
        # per-head lane mask for GATv2 (head h occupies lanes [h*oc, (h+1)*oc))
        "hmask": jnp.repeat(jnp.eye(heads, dtype=F32), oc, axis=1),      # [heads, C]
    }
    for g in ("i", "f", "g", "o"):
        params["s2s"]["wq_" + g] = w((H, H))
        params["s2s"]["wr_" + g] = w((H, H))
        params["s2s"]["wh_" + g] = w((H, H))
        params["s2s"]["b_" + g] = zeros((1, H))
    params["bn2_weff"], params["bn2_beff"] = bn_folded(H * NR, OH)
    params["bn3_weff"], params["bn3_beff"] = bn_folded(H * NR, OH)
    params["bn4_weff"], params["bn4_beff"] = bn_folded(2 * H * NR, OH)
    for et in inter_edges:
        params["inter"][et] = {
            "wl": w((H, C)), "bl": zeros((1, C)),
            "wr": w((H, C)), "br": zeros((1, C)),
            "att": w((1, C)), "bias": zeros((1, C)),
        }
    return params


def build_data(key, reactants, x_in_dim, edge_in_dim,
               num_graphs=2, nodes_per_graph=8):
    N = num_graphs * nodes_per_graph
    keys = iter(jax.random.split(key, 16))

    def ring_edges():
        src, dst = [], []
        for g in range(num_graphs):
            base = g * nodes_per_graph
            for i in range(nodes_per_graph):
                u = base + i
                v = base + (i + 1) % nodes_per_graph
                src += [u, v]
                dst += [v, u]
        return jnp.array([src, dst], dtype=jnp.int32)

    data = {
        "reactants": reactants,
        "num_graphs": num_graphs,
        "x": {}, "batch": {}, "edge_index": {}, "edge_attr": {},
    }
    batch_vec = jnp.repeat(jnp.arange(num_graphs, dtype=jnp.int32), nodes_per_graph)
    for nt in reactants:
        data["x"][nt] = jax.random.normal(next(keys), (N, x_in_dim), F32)
        data["batch"][nt] = batch_vec
        ei = ring_edges()
        data["edge_index"][(nt, "bond", nt)] = ei
        data["edge_attr"][(nt, "bond", nt)] = jax.random.normal(
            next(keys), (ei.shape[1], edge_in_dim), F32)
    # inter edges: node i of src type -> node i of dst type (same graph)
    idx = jnp.arange(N, dtype=jnp.int32)
    inter = jnp.stack([idx, idx], axis=0)
    data["edge_index"][("r1", "interacts", "r2")] = inter
    data["edge_index"][("r2", "interacts", "r1")] = inter
    return data


# ----------------------------------------------------------------------------

if __name__ == "__main__":
    X_IN_DIM = 8
    EDGE_IN_DIM = 4
    HIDDEN = 64
    OUT_HIDDEN = 128
    REACTANTS = ["r1", "r2"]
    INTER_EDGES = [("r1", "interacts", "r2"), ("r2", "interacts", "r1")]

    root_key = jax.random.PRNGKey(0)
    pkey, dkey = jax.random.split(root_key)
    params = init_params(pkey, X_IN_DIM, EDGE_IN_DIM, HIDDEN, OUT_HIDDEN,
                         REACTANTS, INTER_EDGES)
    data = build_data(dkey, REACTANTS, X_IN_DIM, EDGE_IN_DIM,
                      num_graphs=2, nodes_per_graph=8)

    y0, y1 = reachgnn_forward(params, data, num_pre_mpnn=2, num_blocks=2)
    jax.block_until_ready((y0, y1))
    assert y0.shape == (2, 1) and y1.shape == (2, 1)
    assert bool(jnp.all(jnp.isfinite(y0))) and bool(jnp.all(jnp.isfinite(y1)))
    print("KERNEL_OK")
</pallas_src>

<mosaic_0001>
module attributes {stable_mosaic.version = 11 : i64} {
  func.func @_edge_net_kernel(%arg0: i32, %arg1: memref<32x4xf32, #tpu.memory_space<vmem>>, %arg2: memref<4x128xf32, #tpu.memory_space<vmem>>, %arg3: memref<1x128xf32, #tpu.memory_space<vmem>>, %arg4: memref<128x4096xf32, #tpu.memory_space<vmem>>, %arg5: memref<1x4096xf32, #tpu.memory_space<vmem>>, %arg6: memref<32x4096xbf16, #tpu.memory_space<vmem>>) attributes {dimension_semantics = [#tpu.dimension_semantics<arbitrary>], iteration_bounds = array<i64: 1>, scalar_prefetch = 0 : i64, scratch_operands = 0 : i64, tpu.core_type = #tpu.core_type<tc>, window_params = [{pipeline_mode = #tpu.pipeline_mode<synchronous>, transform_indices = @transform_0, window_bounds = array<i64: 32, 4>}, {pipeline_mode = #tpu.pipeline_mode<synchronous>, transform_indices = @transform_1, window_bounds = array<i64: 4, 128>}, {pipeline_mode = #tpu.pipeline_mode<synchronous>, transform_indices = @transform_2, window_bounds = array<i64: 1, 128>}, {pipeline_mode = #tpu.pipeline_mode<synchronous>, transform_indices = @transform_3, window_bounds = array<i64: 128, 4096>}, {pipeline_mode = #tpu.pipeline_mode<synchronous>, transform_indices = @transform_4, window_bounds = array<i64: 1, 4096>}, {pipeline_mode = #tpu.pipeline_mode<synchronous>, transform_indices = @transform_5, window_bounds = array<i64: 32, 4096>}]} {
    %c0 = arith.constant 0 : index
    %c0_0 = arith.constant 0 : index
    %0 = vector.load %arg1[%c0, %c0_0] : memref<32x4xf32, #tpu.memory_space<vmem>>, vector<32x4xf32>
    %1 = arith.truncf %0 : vector<32x4xf32> to vector<32x4xbf16>
    %c0_1 = arith.constant 0 : index
    %c0_2 = arith.constant 0 : index
    %2 = vector.load %arg2[%c0_1, %c0_2] : memref<4x128xf32, #tpu.memory_space<vmem>>, vector<4x128xf32>
    %3 = arith.truncf %2 : vector<4x128xf32> to vector<4x128xbf16>
    %cst = arith.constant dense<0.000000e+00> : vector<32x128xf32>
    %4 = tpu.matmul %1, %3, %cst {dimension_numbers = #tpu.dot_dimension_numbers<[1], [0], [0], [1], [0, 0, 1, 1], [], []>} : vector<32x4xbf16>, vector<4x128xbf16>, vector<32x128xf32> -> vector<32x128xf32>
    %c0_3 = arith.constant 0 : index
    %c0_4 = arith.constant 0 : index
    %5 = vector.load %arg3[%c0_3, %c0_4] : memref<1x128xf32, #tpu.memory_space<vmem>>, vector<1x128xf32>
    %6 = vector.broadcast %5 : vector<1x128xf32> to vector<32x128xf32>
    %7 = arith.addf %4, %6 : vector<32x128xf32>
    %cst_5 = arith.constant 0.000000e+00 : f32
    %8 = vector.broadcast %cst_5 : f32 to vector<32x128xf32>
    %9 = arith.maximumf %7, %8 : vector<32x128xf32>
    %10 = arith.truncf %9 : vector<32x128xf32> to vector<32x128xbf16>
    %c0_6 = arith.constant 0 : index
    %c0_7 = arith.constant 0 : index
    %11 = vector.load %arg4[%c0_6, %c0_7] : memref<128x4096xf32, #tpu.memory_space<vmem>>, vector<128x4096xf32>
    %12 = arith.truncf %11 : vector<128x4096xf32> to vector<128x4096xbf16>
    %cst_8 = arith.constant dense<0.000000e+00> : vector<32x4096xf32>
    %13 = tpu.matmul %10, %12, %cst_8 {dimension_numbers = #tpu.dot_dimension_numbers<[1], [0], [0], [1], [0, 0, 1, 1], [], []>} : vector<32x128xbf16>, vector<128x4096xbf16>, vector<32x4096xf32> -> vector<32x4096xf32>
    %c0_9 = arith.constant 0 : index
    %c0_10 = arith.constant 0 : index
    %14 = vector.load %arg5[%c0_9, %c0_10] : memref<1x4096xf32, #tpu.memory_space<vmem>>, vector<1x4096xf32>
    %15 = vector.broadcast %14 : vector<1x4096xf32> to vector<32x4096xf32>
    %16 = arith.addf %13, %15 : vector<32x4096xf32>
    %17 = arith.truncf %16 : vector<32x4096xf32> to vector<32x4096xbf16>
    %c0_11 = arith.constant 0 : index
    %c0_12 = arith.constant 0 : index
    %18 = vector.load %arg6[%c0_11, %c0_12] : memref<32x4096xbf16, #tpu.memory_space<vmem>>, vector<32x4096xbf16>
    tpu.vector_store %arg6[%c0_11, %c0_12], %17 {strides = array<i32>} : memref<32x4096xbf16, #tpu.memory_space<vmem>>, vector<32x4096xbf16>,
    return
  }
  func.func @transform_0(%arg0: i32) -> (i32, i32) {
    %c0_i32 = arith.constant 0 : i32
    %c0_i32_0 = arith.constant 0 : i32
    %c0_i32_1 = arith.constant 0 : i32
    return %c0_i32, %c0_i32_0 : i32, i32
  }
  func.func @transform_1(%arg0: i32) -> (i32, i32) {
    %c0_i32 = arith.constant 0 : i32
    %c0_i32_0 = arith.constant 0 : i32
    %c0_i32_1 = arith.constant 0 : i32
    return %c0_i32, %c0_i32_0 : i32, i32
  }
  func.func @transform_2(%arg0: i32) -> (i32, i32) {
    %c0_i32 = arith.constant 0 : i32
    %c0_i32_0 = arith.constant 0 : i32
    %c0_i32_1 = arith.constant 0 : i32
    return %c0_i32, %c0_i32_0 : i32, i32
  }
  func.func @transform_3(%arg0: i32) -> (i32, i32) {
    %c0_i32 = arith.constant 0 : i32
    %c0_i32_0 = arith.constant 0 : i32
    %c0_i32_1 = arith.constant 0 : i32
    return %c0_i32, %c0_i32_0 : i32, i32
  }
  func.func @transform_4(%arg0: i32) -> (i32, i32) {
    %c0_i32 = arith.constant 0 : i32
    %c0_i32_0 = arith.constant 0 : i32
    %c0_i32_1 = arith.constant 0 : i32
    return %c0_i32, %c0_i32_0 : i32, i32
  }
  func.func @transform_5(%arg0: i32) -> (i32, i32) {
    %c0_i32 = arith.constant 0 : i32
    %c0_i32_0 = arith.constant 0 : i32
    %c0_i32_1 = arith.constant 0 : i32
    return %c0_i32, %c0_i32_0 : i32, i32
  }
}

</mosaic_0001>

<bundles_post_ra>
// kernel: tpu_custom_call.1
= control target key start
LH: loop header
LB: loop body
LE: loop exit
PB: predicated region body
PF: predicated region fallthrough
CT: control target
= control target key end

     0   :  { %10 = vsyncpa [#allocation3], 0  ;;  %s2891_s0 = inlined_call_operand.vmem [shape: f32[32,4], index: 0, kind: input, shape index: {}]   ;;  %s2892_s1 = inlined_call_operand.hbm [shape: f32[4,128], index: 1, kind: input, shape index: {}]   ;;  %s2893_s2 = inlined_call_operand.hbm [shape: f32[1,128], index: 2, kind: input, shape index: {}]   ;;  %s2894_s3 = inlined_call_operand.hbm [shape: f32[128,4096], index: 3, kind: input, shape index: {}]   ;;  %s2895_s4 = inlined_call_operand.hbm [shape: f32[1,4096], index: 4, kind: input, shape index: {}]   ;;  %s2896_s5 = inlined_call_operand.hbm [shape: bf16[32,4096], index: 5, kind: output, shape index: {}]  }
   0x1   :  { %11 = vsyncpa [#allocation6], 0 }
   0x2   :  { %12 = vsyncpa [#allocation9], 0 }
   0x3   :  { %13 = vsyncpa [#allocation4], 0  ;;  %s2662_s18 = smov [#allocation5]   ;;  %s2663_s20 = smov [#allocation2]  }
   0x4   :  { %s32_s19 = sshll.u32 %s2662_s18, 4  ;;  %s22_s21 = sshll.u32 %s2663_s20, 4  ;;  %s33_s19 = int_to_ptr.vmem [resolvable:$true] %s32_s19  ;;  %s23_s21 = int_to_ptr.vmem [resolvable:$true] %s22_s21 }
   0x5   :  { %s2562_s22 = scalar_lea.vmem %s33_s19, 16  ;;  %s2566_s23 = scalar_lea.vmem %s33_s19, 32 }
   0x6   :  { %p2563_p0 = scmp.ne.s32.totalorder %s33_s19, %s2562_s22  ;;  %p2567_p1 = scmp.lt.s32.totalorder %s33_s19, %s33_s19 }
   0x7   :  { %p2568_p2 = scmp.lt.s32.totalorder %s2566_s23, %s2562_s22 }
   0x9   :  { %p2569_p3 = por %p2568_p2, %p2567_p1 }
   0xb   :  { %p2570_p4 = pnand %p2569_p3, %p2563_p0 }
   0xd   :  { %2573 = shalt.err (!%p2570_p4)
}
   0xe   :  { %35 = dma.hbm_to_vmem [thread:$0]  %s2893_s2, 16, %s33_s19, [#allocation6]  }
   0xf   :  { %s2582_s26 = scalar_lea.vmem %s23_s21, 64  ;;  %p2587_p6 = scmp.lt.s32.totalorder %s23_s21, %s23_s21 }
  0x10   :  { %p2583_p5 = scmp.ne.s32.totalorder %s23_s21, %s2582_s26  ;;  %p2588_p7 = scmp.lt.s32.totalorder %s2582_s26, %s2582_s26 }
  0x12   :  { %p2589_p8 = por %p2588_p7, %p2587_p6 }
  0x14   :  { %p2590_p9 = pnand %p2589_p8, %p2583_p5 }
  0x16   :  { %2593 = shalt.err (!%p2590_p9)
}
  0x17   :  { %25 = dma.hbm_to_vmem [thread:$0]  %s2892_s1, 64, %s23_s21, [#allocation3]  }
  0x18   :  { %s2664_s29 = smov [#allocation7]  }
  0x19   :  { %s41_s30 = sshll.u32 %s2664_s29, 4  ;;  %s42_s30 = int_to_ptr.vmem [resolvable:$true] %s41_s30 }
  0x1a   :  { %s2602_s6 = scalar_lea.vmem %s42_s30, 65536  ;;  %p2607_p11 = scmp.lt.s32.totalorder %s42_s30, %s42_s30 }
  0x1b   :  { %p2603_p10 = scmp.ne.s32.totalorder %s42_s30, %s2602_s6  ;;  %p2608_p12 = scmp.lt.s32.totalorder %s2602_s6, %s2602_s6 }
  0x1d   :  { %p2609_p13 = por %p2608_p12, %p2607_p11 }
  0x1f   :  { %p2610_p0 = pnand %p2609_p13, %p2603_p10 }
  0x21   :  { %2613 = shalt.err (!%p2610_p0)
}
  0x22   :  { %s2665_s2 = smov 4096   ;;  %s2666_s7 = smov 256  }
  0x23   :  { %47 = dma.hbm_to_vmem [thread:$0]  %s2894_s3, 65536, %s42_s30, [#allocation6], %s2665_s2, %s2665_s2, %s2666_s7  }
  0x24   :  { %s2667_s10 = smov [#allocation8]  }
  0x25   :  { %s54_s11 = sshll.u32 %s2667_s10, 4  ;;  %s55_s11 = int_to_ptr.vmem [resolvable:$true] %s54_s11 }
  0x26   :  { %s2622_s1 = scalar_lea.vmem %s55_s11, 512  ;;  %p2627_p2 = scmp.lt.s32.totalorder %s55_s11, %s55_s11 }
  0x27   :  { %p2623_p1 = scmp.ne.s32.totalorder %s55_s11, %s2622_s1  ;;  %p2628_p3 = scmp.lt.s32.totalorder %s2622_s1, %s2622_s1 }
  0x29   :  { %p2629_p4 = por %p2628_p3, %p2627_p2 }
  0x2b   :  { %p2630_p5 = pnand %p2629_p4, %p2623_p1 }
  0x2d   :  { %2633 = shalt.err (!%p2630_p5)
}
  0x2e   :  { %57 = dma.hbm_to_vmem [thread:$0]  %s2895_s4, 512, %s55_s11, [#allocation9]  }
  0x2f   :  { %2654 = dma.done.wait [#allocation3], 64  }
  0x30   :  { %2655 = vsyncadd [#allocation3], 4294967232 }
  0x31   :  { %2656 = dma.done.wait [#allocation6], 65552  }
  0x32   :  { %2657 = vsyncadd [#allocation6], 4294901744 }
  0x33   :  { %2658 = dma.done.wait [#allocation9], 512  }
  0x34   :  { %2659 = vsyncadd [#allocation9], 4294966784  ;;  %v77_v0 = vld [vmem:[#allocation2] sm:$0xf]  ;;  %vm93_vm0 = vcmask 1041408   ;;  %v72_v2 = vld [vmem:[%s2891_s0 + $0x8] sm:$0xff] }
  0x35   :  { %v71_v1 = vld [vmem:[%s2891_s0] sm:$0xff]  ;;  %vm86_vm1 = vcmask 31744   ;;  %v78_v3 = vpack.c.bf16 %v77_v0, %v77_v0  ;;  %v73_v5 = vld [vmem:[%s2891_s0 + $0x10] sm:$0xff]  ;;  %v74_v6 = vld [vmem:[%s2891_s0 + $0x18] sm:$0xff]  ;;  %s2669_s0 = smov [#allocation10]  }
  0x36   :  { %v75_v4 = vpack.c.bf16 %v72_v2, %v71_v1  ;;  %v601_v7 = vld [vmem:[#allocation7 + $0xe08] sm:$0xff]  ;;  %v603_v9 = vld [vmem:[#allocation7 + $0xe18] sm:$0xff]  ;;  %v76_v12 = vpack.c.bf16 %v74_v6, %v73_v5  ;;  %v600_v15 = vld [vmem:[#allocation7 + $0xe00] sm:$0xff]  ;;  %s2389_s20 = sshll.u32 %s2669_s0, 4  ;;  %s2390_s20 = int_to_ptr.vmem [resolvable:$true] %s2389_s20 }
  0x37   :  { %v633_v8 = vld [vmem:[#allocation7 + $0xf08] sm:$0xff]  ;;  %v635_v10 = vld [vmem:[#allocation7 + $0xf18] sm:$0xff]  ;;  %2543 = vmatprep.subr.msk.bf16.mxu0 %vm93_vm0, %v78_v3  ;;  %v95_v11 = vsel %vm93_vm0, %v78_v3, 0  ;;  %v632_v16 = vld [vmem:[#allocation7 + $0xf00] sm:$0xff]  ;;  %s2634_s21 = scalar_lea.vmem %s2390_s20, 8192  ;;  %p2639_p7 = scmp.lt.s32.totalorder %s2390_s20, %s2390_s20 }
  0x38   :  { %2539 = vmatprep.mubr.msk.bf16.mxu0 %vm86_vm1, %v75_v4  ;;  %v889_v13 = vpack.c.bf16 %v633_v8, %v601_v7  ;;  %v891_v14 = vpack.c.bf16 %v635_v10, %v603_v9  ;;  %v602_v17 = vld [vmem:[#allocation7 + $0xe10] sm:$0xff]  ;;  %2538 = vmatpush3.bf16.msra.mxu0 %v95_v11  ;;  %v888_v18 = vpack.c.bf16 %v632_v16, %v600_v15  ;;  %v537_v20 = vld [vmem:[#allocation7 + $0xc08] sm:$0xff]  ;;  %v539_v24 = vld [vmem:[#allocation7 + $0xc18] sm:$0xff]  ;;  %p2635_p6 = scmp.ne.s32.totalorder %s2390_s20, %s2634_s21  ;;  %p2640_p8 = scmp.lt.s32.totalorder %s2634_s21, %s2634_s21 }
  0x39   :  { %v634_v19 = vld [vmem:[#allocation7 + $0xf10] sm:$0xff]  ;;  %v569_v21 = vld [vmem:[#allocation7 + $0xd08] sm:$0xff]  ;;  %v571_v25 = vld [vmem:[#allocation7 + $0xd18] sm:$0xff] }
  0x3a   :  { %1088 = vmatprep.subr.bf16.mxu1 %v889_v13  ;;  %1141 = vmatprep.subr.bf16.mxu0 %v891_v14  ;;  %v890_v22 = vpack.c.bf16 %v634_v19, %v602_v17  ;;  %v857_v23 = vpack.c.bf16 %v569_v21, %v537_v20  ;;  %v536_v26 = vld [vmem:[#allocation7 + $0xc00] sm:$0xff]  ;;  %v859_v27 = vpack.c.bf16 %v571_v25, %v539_v24  ;;  %v538_v29 = vld [vmem:[#allocation7 + $0xc10] sm:$0xff]  ;;  %v473_v32 = vld [vmem:[#allocation7 + $0xa08] sm:$0xff]  ;;  %p2641_p9 = por %p2640_p8, %p2639_p7 }
  0x3b   :  { %1089 = vmatpush1.bf16.msra.mxu1 %v888_v18  ;;  %v568_v28 = vld [vmem:[#allocation7 + $0xd00] sm:$0xff]  ;;  %v570_v30 = vld [vmem:[#allocation7 + $0xd10] sm:$0xff]  ;;  %2540 = vmatmul.mubr.msk.bf16.vlgmr.msra.gmra.mxu0 %vm86_vm1, %v76_v12  ;;  %v505_v33 = vld [vmem:[#allocation7 + $0xb08] sm:$0xff] }
  0x3c   :  { %1090 = vmatprep.subr.bf16.mxu1 %v857_v23  ;;  %v856_v31 = vpack.c.bf16 %v568_v28, %v536_v26  ;;  %v475_v34 = vld [vmem:[#allocation7 + $0xa18] sm:$0xff]  ;;  %1142 = vmatpush1.bf16.msra.mxu0 %v890_v22  ;;  %v858_v35 = vpack.c.bf16 %v570_v30, %v538_v29  ;;  %v825_v36 = vpack.c.bf16 %v505_v33, %v473_v32  ;;  %v472_v38 = vld [vmem:[#allocation7 + $0xa00] sm:$0xff]  ;;  %v474_v41 = vld [vmem:[#allocation7 + $0xa10] sm:$0xff]  ;;  %p2642_p10 = pnand %p2641_p9, %p2635_p6 }
  0x3d   :  { %v507_v37 = vld [vmem:[#allocation7 + $0xb18] sm:$0xff]  ;;  %v504_v39 = vld [vmem:[#allocation7 + $0xb00] sm:$0xff]  ;;  %1143 = vmatprep.subr.bf16.mxu0 %v859_v27  ;;  %v506_v42 = vld [vmem:[#allocation7 + $0xb10] sm:$0xff] }
  0x3e   :  { %v827_v40 = vpack.c.bf16 %v507_v37, %v475_v34  ;;  %v409_v43 = vld [vmem:[#allocation7 + $0x808] sm:$0xff]  ;;  %v824_v44 = vpack.c.bf16 %v504_v39, %v472_v38  ;;  %v411_v46 = vld [vmem:[#allocation7 + $0x818] sm:$0xff]  ;;  %v408_v49 = vld [vmem:[#allocation7 + $0x800] sm:$0xff]  ;;  %v826_v51 = vpack.c.bf16 %v506_v42, %v474_v41 }
  0x3f   :  { %1091 = vmatpush1.bf16.msra.mxu1 %v856_v31  ;;  %v441_v45 = vld [vmem:[#allocation7 + $0x908] sm:$0xff]  ;;  %v443_v47 = vld [vmem:[#allocation7 + $0x918] sm:$0xff]  ;;  %v440_v50 = vld [vmem:[#allocation7 + $0x900] sm:$0xff] }
  0x40   :  { %1092 = vmatprep.subr.bf16.mxu1 %v825_v36  ;;  %v793_v48 = vpack.c.bf16 %v441_v45, %v409_v43  ;;  %1144 = vmatpush1.bf16.msra.mxu0 %v858_v35  ;;  %v345_v52 = vld [vmem:[#allocation7 + $0x608] sm:$0xff]  ;;  %v795_v54 = vpack.c.bf16 %v443_v47, %v411_v46  ;;  %v410_v55 = vld [vmem:[#allocation7 + $0x810] sm:$0xff]  ;;  %v792_v57 = vpack.c.bf16 %v440_v50, %v408_v49  ;;  %v347_v58 = vld [vmem:[#allocation7 + $0x618] sm:$0xff]  ;;  %v2668_v47 = vmov 0  }
  0x41   :  { %v377_v53 = vld [vmem:[#allocation7 + $0x708] sm:$0xff]  ;;  %1145 = vmatprep.subr.bf16.mxu0 %v827_v40  ;;  %v442_v56 = vld [vmem:[#allocation7 + $0x910] sm:$0xff]  ;;  %v379_v59 = vld [vmem:[#allocation7 + $0x718] sm:$0xff]  ;;  %1120 = vmatprep.mubr.bf16.mxu1 %v2668_v47 }
  0x42   :  { %v761_v60 = vpack.c.bf16 %v377_v53, %v345_v52  ;;  %v344_v61 = vld [vmem:[#allocation7 + $0x600] sm:$0xff]  ;;  %v794_v63 = vpack.c.bf16 %v442_v56, %v410_v55  ;;  %v763_v0 = vpack.c.bf16 %v379_v59, %v347_v58  ;;  %v346_v1 = vld [vmem:[#allocation7 + $0x610] sm:$0xff]  ;;  %v281_v5 = vld [vmem:[#allocation7 + $0x408] sm:$0xff]  ;;  %1173 = vmatprep.mubr.bf16.mxu0 %v2668_v47 }
  0x43   :  { %1093 = vmatpush1.bf16.msra.mxu1 %v824_v44  ;;  %v376_v62 = vld [vmem:[#allocation7 + $0x700] sm:$0xff]  ;;  %v378_v2 = vld [vmem:[#allocation7 + $0x710] sm:$0xff]  ;;  %v313_v6 = vld [vmem:[#allocation7 + $0x508] sm:$0xff] }
  0x44   :  { %1094 = vmatprep.subr.bf16.mxu1 %v793_v48  ;;  %1146 = vmatpush1.bf16.msra.mxu0 %v826_v51  ;;  %v760_v3 = vpack.c.bf16 %v376_v62, %v344_v61  ;;  %v762_v4 = vpack.c.bf16 %v378_v2, %v346_v1  ;;  %v283_v7 = vld [vmem:[#allocation7 + $0x418] sm:$0xff]  ;;  %v729_v8 = vpack.c.bf16 %v313_v6, %v281_v5  ;;  %v280_v10 = vld [vmem:[#allocation7 + $0x400] sm:$0xff]  ;;  %v282_v14 = vld [vmem:[#allocation7 + $0x410] sm:$0xff] }
  0x45   :  { %1147 = vmatprep.subr.bf16.mxu0 %v795_v54  ;;  %v315_v9 = vld [vmem:[#allocation7 + $0x518] sm:$0xff]  ;;  %v312_v11 = vld [vmem:[#allocation7 + $0x500] sm:$0xff]  ;;  %v314_v15 = vld [vmem:[#allocation7 + $0x510] sm:$0xff] }
  0x46   :  { %v731_v12 = vpack.c.bf16 %v315_v9, %v283_v7  ;;  %v728_v13 = vpack.c.bf16 %v312_v11, %v280_v10  ;;  %v730_v16 = vpack.c.bf16 %v314_v15, %v282_v14  ;;  %v217_v17 = vld [vmem:[#allocation7 + $0x208] sm:$0xff]  ;;  %v219_v19 = vld [vmem:[#allocation7 + $0x218] sm:$0xff]  ;;  %v216_v22 = vld [vmem:[#allocation7 + $0x200] sm:$0xff] }
  0x47   :  { %1095 = vmatpush1.bf16.msra.mxu1 %v792_v57  ;;  %v249_v18 = vld [vmem:[#allocation7 + $0x308] sm:$0xff]  ;;  %v251_v21 = vld [vmem:[#allocation7 + $0x318] sm:$0xff]  ;;  %v248_v23 = vld [vmem:[#allocation7 + $0x300] sm:$0xff] }
  0x48   :  { %1096 = vmatprep.subr.bf16.mxu1 %v761_v60  ;;  %1148 = vmatpush1.bf16.msra.mxu0 %v794_v63  ;;  %v697_v20 = vpack.c.bf16 %v249_v18, %v217_v17  ;;  %v699_v24 = vpack.c.bf16 %v251_v21, %v219_v19  ;;  %v696_v25 = vpack.c.bf16 %v248_v23, %v216_v22  ;;  %v218_v26 = vld [vmem:[#allocation7 + $0x210] sm:$0xff]  ;;  %v153_v29 = vld [vmem:[#allocation7 + $0x8] sm:$0xff]  ;;  %v155_v31 = vld [vmem:[#allocation7 + $0x18] sm:$0xff] }
  0x49   :  { %1149 = vmatprep.subr.bf16.mxu0 %v763_v0  ;;  %v250_v27 = vld [vmem:[#allocation7 + $0x310] sm:$0xff]  ;;  %v185_v30 = vld [vmem:[#allocation7 + $0x108] sm:$0xff]  ;;  %v187_v33 = vld [vmem:[#allocation7 + $0x118] sm:$0xff] }
  0x4a   :  { %v698_v28 = vpack.c.bf16 %v250_v27, %v218_v26  ;;  %v665_v32 = vpack.c.bf16 %v185_v30, %v153_v29  ;;  %v152_v34 = vld [vmem:[#allocation7] sm:$0xff]  ;;  %v667_v36 = vpack.c.bf16 %v187_v33, %v155_v31  ;;  %v154_v38 = vld [vmem:[#allocation7 + $0x10] sm:$0xff]  ;;  %v605_v41 = vld [vmem:[#allocation7 + $0xe28] sm:$0xff] }
  0x4b   :  { %1097 = vmatpush1.bf16.msra.mxu1 %v760_v3  ;;  %v184_v35 = vld [vmem:[#allocation7 + $0x100] sm:$0xff]  ;;  %v186_v39 = vld [vmem:[#allocation7 + $0x110] sm:$0xff]  ;;  %v637_v42 = vld [vmem:[#allocation7 + $0xf28] sm:$0xff] }
  0x4c   :  { %1150 = vmatpush1.bf16.msra.mxu0 %v762_v4  ;;  %1098 = vmatprep.subr.bf16.mxu1 %v729_v8  ;;  %v664_v37 = vpack.c.bf16 %v184_v35, %v152_v34  ;;  %v666_v40 = vpack.c.bf16 %v186_v39, %v154_v38  ;;  %v607_v43 = vld [vmem:[#allocation7 + $0xe38] sm:$0xff]  ;;  %v893_v44 = vpack.c.bf16 %v637_v42, %v605_v41  ;;  %v604_v54 = vld [vmem:[#allocation7 + $0xe20] sm:$0xff]  ;;  %v606_v57 = vld [vmem:[#allocation7 + $0xe30] sm:$0xff] }
  0x4d   :  { %1151 = vmatprep.subr.bf16.mxu0 %v731_v12  ;;  %v639_v45 = vld [vmem:[#allocation7 + $0xf38] sm:$0xff]  ;;  %v636_v55 = vld [vmem:[#allocation7 + $0xf20] sm:$0xff]  ;;  %v638_v58 = vld [vmem:[#allocation7 + $0xf30] sm:$0xff] }
  0x4e   :  { %v895_v46 = vpack.c.bf16 %v639_v45, %v607_v43  ;;  %v2403_v50 = vld [vmem:[#allocation5] ss:$0 sm:$0xff]  ;;  %v541_v59 = vld [vmem:[#allocation7 + $0xc28] sm:$0xff]  ;;  %v892_v1 = vpack.c.bf16 %v636_v55, %v604_v54  ;;  %v894_v2 = vpack.c.bf16 %v638_v58, %v606_v57  ;;  %v540_v3 = vld [vmem:[#allocation7 + $0xc20] sm:$0xff] }
  0x4f   :  { %1099 = vmatpush1.bf16.msra.mxu1 %v728_v13  ;;  %v573_v60 = vld [vmem:[#allocation7 + $0xd28] sm:$0xff]  ;;  %v543_v61 = vld [vmem:[#allocation7 + $0xc38] sm:$0xff]  ;;  %v572_v4 = vld [vmem:[#allocation7 + $0xd20] sm:$0xff] }
  0x50   :  { %1152 = vmatpush1.bf16.msra.mxu0 %v730_v16  ;;  %1100 = vmatprep.subr.bf16.mxu1 %v697_v20  ;;  %v575_v62 = vld [vmem:[#allocation7 + $0xd38] sm:$0xff]  ;;  %v861_v7 = vpack.c.bf16 %v573_v60, %v541_v59  ;;  %v542_v9 = vld [vmem:[#allocation7 + $0xc30] sm:$0xff]  ;;  %v477_v11 = vld [vmem:[#allocation7 + $0xa28] sm:$0xff]  ;;  %v860_v16 = vpack.c.bf16 %v572_v4, %v540_v3 }
  0x51   :  { %1153 = vmatprep.subr.bf16.mxu0 %v699_v24  ;;  %v863_v8 = vpack.c.bf16 %v575_v62, %v543_v61  ;;  %v574_v10 = vld [vmem:[#allocation7 + $0xd30] sm:$0xff]  ;;  %v509_v12 = vld [vmem:[#allocation7 + $0xb28] sm:$0xff]  ;;  %v479_v13 = vld [vmem:[#allocation7 + $0xa38] sm:$0xff] }
  0x52   :  { %v511_v14 = vld [vmem:[#allocation7 + $0xb38] sm:$0xff]  ;;  %v862_v17 = vpack.c.bf16 %v574_v10, %v542_v9  ;;  %v476_v18 = vld [vmem:[#allocation7 + $0xa20] sm:$0xff]  ;;  %v829_v21 = vpack.c.bf16 %v509_v12, %v477_v11  ;;  %v478_v23 = vld [vmem:[#allocation7 + $0xa30] sm:$0xff] }
  0x53   :  { %1101 = vmatpush1.bf16.msra.mxu1 %v696_v25  ;;  %v508_v19 = vld [vmem:[#allocation7 + $0xb20] sm:$0xff]  ;;  %v831_v22 = vpack.c.bf16 %v511_v14, %v479_v13  ;;  %v510_v24 = vld [vmem:[#allocation7 + $0xb30] sm:$0xff]  ;;  %v413_v25 = vld [vmem:[#allocation7 + $0x828] sm:$0xff] }
  0x54   :  { %1154 = vmatpush1.bf16.msra.mxu0 %v698_v28  ;;  %1102 = vmatprep.subr.bf16.mxu1 %v665_v32  ;;  %v445_v26 = vld [vmem:[#allocation7 + $0x928] sm:$0xff]  ;;  %v415_v27 = vld [vmem:[#allocation7 + $0x838] sm:$0xff]  ;;  %v828_v30 = vpack.c.bf16 %v508_v19, %v476_v18  ;;  %v830_v31 = vpack.c.bf16 %v510_v24, %v478_v23  ;;  %v412_v32 = vld [vmem:[#allocation7 + $0x820] sm:$0xff] }
  0x55   :  { %1155 = vmatprep.subr.bf16.mxu0 %v667_v36  ;;  %v447_v28 = vld [vmem:[#allocation7 + $0x938] sm:$0xff]  ;;  %v444_v33 = vld [vmem:[#allocation7 + $0x920] sm:$0xff]  ;;  %v797_v35 = vpack.c.bf16 %v445_v26, %v413_v25  ;;  %v446_v38 = vld [vmem:[#allocation7 + $0x930] sm:$0xff] }
  0x56   :  { %v799_v36 = vpack.c.bf16 %v447_v28, %v415_v27  ;;  %v349_v39 = vld [vmem:[#allocation7 + $0x628] sm:$0xff]  ;;  %v351_v41 = vld [vmem:[#allocation7 + $0x638] sm:$0xff]  ;;  %v796_v43 = vpack.c.bf16 %v444_v33, %v412_v32  ;;  %v348_v45 = vld [vmem:[#allocation7 + $0x620] sm:$0xff] }
  0x57   :  { %1103 = vmatpush1.bf16.msra.mxu1 %v664_v37  ;;  %v414_v37 = vld [vmem:[#allocation7 + $0x830] sm:$0xff]  ;;  %v383_v42 = vld [vmem:[#allocation7 + $0x738] sm:$0xff]  ;;  %v284_v58 = vld [vmem:[#allocation7 + $0x420] sm:$0xff] }
  0x58   :  { %1156 = vmatpush1.bf16.msra.mxu0 %v666_v40  ;;  %1194 = vmatprep.subr.bf16.mxu1 %v893_v44  ;;  %v381_v40 = vld [vmem:[#allocation7 + $0x728] sm:$0xff]  ;;  %v798_v44 = vpack.c.bf16 %v446_v38, %v414_v37  ;;  %v287_v54 = vld [vmem:[#allocation7 + $0x438] sm:$0xff]  ;;  %v316_v59 = vld [vmem:[#allocation7 + $0x520] sm:$0xff] }
  0x59   :  { %1247 = vmatprep.subr.bf16.mxu0 %v895_v46  ;;  %v380_v46 = vld [vmem:[#allocation7 + $0x720] sm:$0xff]  ;;  %v319_v55 = vld [vmem:[#allocation7 + $0x538] sm:$0xff]  ;;  %v286_v62 = vld [vmem:[#allocation7 + $0x430] sm:$0xff]  ;;  %v732_v4 = vpack.c.bf16 %v316_v59, %v284_v58 }
  0x5a   :  { %v735_v61 = vpack.c.bf16 %v319_v55, %v287_v54  ;;  %v255_v3 = vld [vmem:[#allocation7 + $0x338] sm:$0xff]  ;;  %v222_v11 = vld [vmem:[#allocation7 + $0x230] sm:$0xff]  ;;  %v157_v13 = vld [vmem:[#allocation7 + $0x28] sm:$0xff] }
  0x5b   :  { %v254_v12 = vld [vmem:[#allocation7 + $0x330] sm:$0xff]  ;;  %v189_v14 = vld [vmem:[#allocation7 + $0x128] sm:$0xff]  ;;  %v156_v19 = vld [vmem:[#allocation7 + $0x20] sm:$0xff] }
  0x5c   :  { %v702_v18 = vpack.c.bf16 %v254_v12, %v222_v11  ;;  %v158_v23 = vld [vmem:[#allocation7 + $0x30] sm:$0xff]  ;;  %v609_v25 = vld [vmem:[#allocation7 + $0xe48] sm:$0xff]  ;;  %v611_v27 = vld [vmem:[#allocation7 + $0xe58] sm:$0xff] }
  0x5d   :  { %v190_v24 = vld [vmem:[#allocation7 + $0x130] sm:$0xff]  ;;  %v641_v26 = vld [vmem:[#allocation7 + $0xf48] sm:$0xff]  ;;  %v643_v28 = vld [vmem:[#allocation7 + $0xf58] sm:$0xff] }
  0x5e   :  { %v640_v32 = vld [vmem:[#allocation7 + $0xf40] sm:$0xff]  ;;  %v897_v33 = vpack.c.bf16 %v641_v26, %v609_v25  ;;  %v642_v37 = vld [vmem:[#allocation7 + $0xf50] sm:$0xff]  ;;  %v545_v38 = vld [vmem:[#allocation7 + $0xc48] sm:$0xff] }
  0x5f   :  { %v515_v54 = vld [vmem:[#allocation7 + $0xb58] sm:$0xff]  ;;  %v512_v58 = vld [vmem:[#allocation7 + $0xb40] sm:$0xff]  ;;  %v450_v11 = vld [vmem:[#allocation7 + $0x950] sm:$0xff] }
  0x60   :  { %v353_v12 = vld [vmem:[#allocation7 + $0x648] sm:$0xff]  ;;  %v291_v26 = vld [vmem:[#allocation7 + $0x458] sm:$0xff] }
  0x61   :  { %v321_v25 = vld [vmem:[#allocation7 + $0x548] sm:$0xff] }
  0xfb   :  { %v2541_v48 = vpop.f32.mrf.mxu0 }
  0xfc   :  { %v140_v15 = vadd.f32 %v2541_v48, %v2403_v50  ;;  %v765_v48 = vpack.c.bf16 %v381_v40, %v349_v39  ;;  %v577_v39 = vld [vmem:[#allocation7 + $0xd48] sm:$0xff]  ;;  %v547_v40 = vld [vmem:[#allocation7 + $0xc58] sm:$0xff] }
  0xfd   :  { %v131_v49 = vpop.f32.mrf.mxu0 }
  0xfe   :  { %v132_v52 = vadd.f32 %v2403_v50, %v131_v49  ;;  %v148_v29 = vmax.f32 %v140_v15, 0.0  ;;  %v767_v49 = vpack.c.bf16 %v383_v42, %v351_v41  ;;  %v159_v15 = vld [vmem:[#allocation7 + $0x38] sm:$0xff] }
  0xff   :  { %v2542_v51 = vpop.f32.mrf.mxu0  ;;  %v579_v41 = vld [vmem:[#allocation7 + $0xd58] sm:$0xff] }
 0x100   :  { %v146_v63 = vmax.f32 %v132_v52, 0.0  ;;  %v143_v5 = vadd.f32 %v2542_v51, %v2403_v50  ;;  %v382_v51 = vld [vmem:[#allocation7 + $0x730] sm:$0xff]  ;;  %v285_v52 = vld [vmem:[#allocation7 + $0x428] sm:$0xff] }
 0x101   :  { %v134_v53 = vpop.f32.mrf.mxu0 }
 0x102   :  { %v135_v56 = vadd.f32 %v2403_v50, %v134_v53  ;;  %v149_v20 = vmax.f32 %v143_v5, 0.0  ;;  %v350_v50 = vld [vmem:[#allocation7 + $0x630] sm:$0xff]  ;;  %v317_v53 = vld [vmem:[#allocation7 + $0x528] sm:$0xff] }
 0x103   :  { %v766_v57 = vpack.c.bf16 %v382_v51, %v350_v50  ;;  %v733_v60 = vpack.c.bf16 %v317_v53, %v285_v52  ;;  %v578_v50 = vld [vmem:[#allocation7 + $0xd50] sm:$0xff]  ;;  %v481_v51 = vld [vmem:[#allocation7 + $0xa48] sm:$0xff]  ;;  %v483_v53 = vld [vmem:[#allocation7 + $0xa58] sm:$0xff] }
 0x104   :  { %v147_v0 = vmax.f32 %v135_v56, 0.0  ;;  %v2736_v34 = vpack.c.bf16 %v149_v20, %v148_v29  ;;  %v764_v56 = vpack.c.bf16 %v380_v46, %v348_v45  ;;  %v188_v20 = vld [vmem:[#allocation7 + $0x120] sm:$0xff]  ;;  %v865_v46 = vpack.c.bf16 %v577_v39, %v545_v38  ;;  %v513_v52 = vld [vmem:[#allocation7 + $0xb48] sm:$0xff]  ;;  %v227_v39 = vld [vmem:[#allocation7 + $0x258] sm:$0xff] }
 0x105   :  { %v668_v29 = vpack.c.bf16 %v188_v20, %v156_v19  ;;  %v576_v45 = vld [vmem:[#allocation7 + $0xd40] sm:$0xff]  ;;  %v833_v59 = vpack.c.bf16 %v513_v52, %v481_v51  ;;  %v257_v38 = vld [vmem:[#allocation7 + $0x348] sm:$0xff]  ;;  %v163_v52 = vld [vmem:[#allocation7 + $0x58] sm:$0xff] }
 0x106   :  { %v2730_v6 = vpack.c.bf16 %v147_v0, %v146_v63  ;;  %v318_v63 = vld [vmem:[#allocation7 + $0x530] sm:$0xff]  ;;  %v221_v0 = vld [vmem:[#allocation7 + $0x228] sm:$0xff]  ;;  %v384_v19 = vld [vmem:[#allocation7 + $0x740] sm:$0xff] }
 0x107   :  { %v734_v5 = vpack.c.bf16 %v318_v63, %v286_v62  ;;  %v514_v62 = vld [vmem:[#allocation7 + $0xb50] sm:$0xff]  ;;  %v417_v63 = vld [vmem:[#allocation7 + $0x848] sm:$0xff] }
 0x108   :  { %1121 = vmatmul.mubr.bf16.vlgmr.msra.gmra.mxu1 %v2730_v6  ;;  %1174 = vmatmul.mubr.bf16.vlgmr.msra.gmra.mxu0 %v2730_v6  ;;  %v193_v51 = vld [vmem:[#allocation7 + $0x148] sm:$0xff] }
 0x109   :  { %1195 = vmatpush1.bf16.msra.mxu1 %v892_v1  ;;  %1248 = vmatpush1.bf16.msra.mxu0 %v894_v2  ;;  %v253_v1 = vld [vmem:[#allocation7 + $0x328] sm:$0xff]  ;;  %v223_v2 = vld [vmem:[#allocation7 + $0x238] sm:$0xff] }
 0x10a   :  { %1196 = vmatprep.subr.bf16.mxu1 %v861_v7  ;;  %1249 = vmatprep.subr.bf16.mxu0 %v863_v8  ;;  %v220_v7 = vld [vmem:[#allocation7 + $0x220] sm:$0xff]  ;;  %v701_v9 = vpack.c.bf16 %v253_v1, %v221_v0  ;;  %v703_v10 = vpack.c.bf16 %v255_v3, %v223_v2  ;;  %v449_v0 = vld [vmem:[#allocation7 + $0x948] sm:$0xff]  ;;  %v419_v1 = vld [vmem:[#allocation7 + $0x858] sm:$0xff] }
 0x10b   :  { %1130 = vmatprep.mubr.bf16.mxu1 %v2668_v47  ;;  %1183 = vmatprep.mubr.bf16.mxu0 %v2668_v47  ;;  %v252_v8 = vld [vmem:[#allocation7 + $0x320] sm:$0xff]  ;;  %v451_v2 = vld [vmem:[#allocation7 + $0x958] sm:$0xff] }
 0x10d   :  { %1197 = vmatpush1.bf16.msra.mxu1 %v860_v16  ;;  %1250 = vmatpush1.bf16.msra.mxu0 %v862_v17  ;;  %v191_v16 = vld [vmem:[#allocation7 + $0x138] sm:$0xff]  ;;  %v700_v17 = vpack.c.bf16 %v252_v8, %v220_v7  ;;  %v448_v7 = vld [vmem:[#allocation7 + $0x940] sm:$0xff]  ;;  %v801_v8 = vpack.c.bf16 %v449_v0, %v417_v63  ;;  %v645_v63 = vld [vmem:[#allocation7 + $0xf68] sm:$0xff] }
 0x10e   :  { %1198 = vmatprep.subr.bf16.mxu1 %v829_v21  ;;  %1251 = vmatprep.subr.bf16.mxu0 %v831_v22  ;;  %v669_v21 = vpack.c.bf16 %v189_v14, %v157_v13  ;;  %v671_v22 = vpack.c.bf16 %v191_v16, %v159_v15  ;;  %v385_v13 = vld [vmem:[#allocation7 + $0x748] sm:$0xff]  ;;  %v355_v14 = vld [vmem:[#allocation7 + $0x658] sm:$0xff] }
 0x10f   :  { %v387_v15 = vld [vmem:[#allocation7 + $0x758] sm:$0xff]  ;;  %v769_v20 = vpack.c.bf16 %v385_v13, %v353_v12  ;;  %v581_v12 = vld [vmem:[#allocation7 + $0xd68] sm:$0xff] }
 0x110   :  { %1131 = vmatmul.mubr.bf16.gmra.mxu1 %v2736_v34  ;;  %1184 = vmatmul.mubr.bf16.gmra.mxu0 %v2736_v34  ;;  %v615_v0 = vld [vmem:[#allocation7 + $0xe78] sm:$0xff] }
 0x111   :  { %1199 = vmatpush1.bf16.msra.mxu1 %v828_v30  ;;  %1252 = vmatpush1.bf16.msra.mxu0 %v830_v31  ;;  %v670_v30 = vpack.c.bf16 %v190_v24, %v158_v23  ;;  %v608_v31 = vld [vmem:[#allocation7 + $0xe40] sm:$0xff]  ;;  %v386_v23 = vld [vmem:[#allocation7 + $0x750] sm:$0xff]  ;;  %v289_v24 = vld [vmem:[#allocation7 + $0x448] sm:$0xff] }
 0x112   :  { %1200 = vmatprep.subr.bf16.mxu1 %v797_v35  ;;  %1253 = vmatprep.subr.bf16.mxu0 %v799_v36  ;;  %v899_v35 = vpack.c.bf16 %v643_v28, %v611_v27  ;;  %v610_v36 = vld [vmem:[#allocation7 + $0xe50] sm:$0xff]  ;;  %v896_v42 = vpack.c.bf16 %v640_v32, %v608_v31  ;;  %v323_v27 = vld [vmem:[#allocation7 + $0x558] sm:$0xff]  ;;  %v320_v31 = vld [vmem:[#allocation7 + $0x540] sm:$0xff]  ;;  %v737_v32 = vpack.c.bf16 %v321_v25, %v289_v24 }
 0x113   :  { %1226 = vmatprep.mubr.bf16.mxu1 %v2668_v47  ;;  %1279 = vmatprep.mubr.bf16.mxu0 %v2668_v47  ;;  %v551_v13 = vld [vmem:[#allocation7 + $0xc78] sm:$0xff]  ;;  %v517_v24 = vld [vmem:[#allocation7 + $0xb68] sm:$0xff] }
 0x114   :  { %v487_v25 = vld [vmem:[#allocation7 + $0xa78] sm:$0xff] }
 0x115   :  { %1201 = vmatpush1.bf16.msra.mxu1 %v796_v43  ;;  %1254 = vmatpush1.bf16.msra.mxu0 %v798_v44  ;;  %v898_v43 = vpack.c.bf16 %v642_v37, %v610_v36  ;;  %v544_v44 = vld [vmem:[#allocation7 + $0xc40] sm:$0xff]  ;;  %v322_v36 = vld [vmem:[#allocation7 + $0x550] sm:$0xff]  ;;  %v225_v37 = vld [vmem:[#allocation7 + $0x248] sm:$0xff] }
 0x116   :  { %1202 = vmatprep.subr.bf16.mxu1 %v765_v48  ;;  %1255 = vmatprep.subr.bf16.mxu0 %v767_v49  ;;  %v867_v48 = vpack.c.bf16 %v579_v41, %v547_v40  ;;  %v546_v49 = vld [vmem:[#allocation7 + $0xc50] sm:$0xff]  ;;  %v864_v55 = vpack.c.bf16 %v576_v45, %v544_v44  ;;  %v259_v40 = vld [vmem:[#allocation7 + $0x358] sm:$0xff]  ;;  %v256_v44 = vld [vmem:[#allocation7 + $0x340] sm:$0xff]  ;;  %v705_v45 = vpack.c.bf16 %v257_v38, %v225_v37 }
 0x117   :  { %v453_v37 = vld [vmem:[#allocation7 + $0x968] sm:$0xff]  ;;  %v423_v38 = vld [vmem:[#allocation7 + $0x878] sm:$0xff] }
 0x119   :  { %1203 = vmatpush1.bf16.msra.mxu1 %v764_v56  ;;  %1256 = vmatpush1.bf16.msra.mxu0 %v766_v57  ;;  %v866_v56 = vpack.c.bf16 %v578_v50, %v546_v49  ;;  %v480_v57 = vld [vmem:[#allocation7 + $0xa40] sm:$0xff]  ;;  %v258_v49 = vld [vmem:[#allocation7 + $0x350] sm:$0xff]  ;;  %v161_v50 = vld [vmem:[#allocation7 + $0x48] sm:$0xff] }
 0x11a   :  { %1204 = vmatprep.subr.bf16.mxu1 %v733_v60  ;;  %1257 = vmatprep.subr.bf16.mxu0 %v735_v61  ;;  %v835_v60 = vpack.c.bf16 %v515_v54, %v483_v53  ;;  %v482_v61 = vld [vmem:[#allocation7 + $0xa50] sm:$0xff]  ;;  %v832_v3 = vpack.c.bf16 %v512_v58, %v480_v57  ;;  %v195_v53 = vld [vmem:[#allocation7 + $0x158] sm:$0xff]  ;;  %v192_v57 = vld [vmem:[#allocation7 + $0x140] sm:$0xff]  ;;  %v673_v58 = vpack.c.bf16 %v193_v51, %v161_v50 }
 0x11b   :  { %v389_v50 = vld [vmem:[#allocation7 + $0x768] sm:$0xff]  ;;  %v359_v51 = vld [vmem:[#allocation7 + $0x678] sm:$0xff] }
 0x11d   :  { %1205 = vmatpush1.bf16.msra.mxu1 %v732_v4  ;;  %1258 = vmatpush1.bf16.msra.mxu0 %v734_v5  ;;  %v834_v4 = vpack.c.bf16 %v514_v62, %v482_v61  ;;  %v416_v5 = vld [vmem:[#allocation7 + $0x840] sm:$0xff]  ;;  %v194_v61 = vld [vmem:[#allocation7 + $0x150] sm:$0xff]  ;;  %v613_v62 = vld [vmem:[#allocation7 + $0xe68] sm:$0xff] }
 0x11e   :  { %1206 = vmatprep.subr.bf16.mxu1 %v701_v9  ;;  %1259 = vmatprep.subr.bf16.mxu0 %v703_v10  ;;  %v803_v9 = vpack.c.bf16 %v451_v2, %v419_v1  ;;  %v418_v10 = vld [vmem:[#allocation7 + $0x850] sm:$0xff]  ;;  %v800_v16 = vpack.c.bf16 %v448_v7, %v416_v5  ;;  %v647_v1 = vld [vmem:[#allocation7 + $0xf78] sm:$0xff]  ;;  %v644_v5 = vld [vmem:[#allocation7 + $0xf60] sm:$0xff]  ;;  %v901_v7 = vpack.c.bf16 %v645_v63, %v613_v62 }
 0x11f   :  { %v325_v62 = vld [vmem:[#allocation7 + $0x568] sm:$0xff]  ;;  %v295_v63 = vld [vmem:[#allocation7 + $0x478] sm:$0xff] }
 0x121   :  { %1207 = vmatpush1.bf16.msra.mxu1 %v700_v17  ;;  %1260 = vmatpush1.bf16.msra.mxu0 %v702_v18  ;;  %v802_v17 = vpack.c.bf16 %v450_v11, %v418_v10  ;;  %v352_v18 = vld [vmem:[#allocation7 + $0x640] sm:$0xff]  ;;  %v646_v10 = vld [vmem:[#allocation7 + $0xf70] sm:$0xff]  ;;  %v549_v11 = vld [vmem:[#allocation7 + $0xc68] sm:$0xff] }
 0x122   :  { %1208 = vmatprep.subr.bf16.mxu1 %v669_v21  ;;  %1261 = vmatprep.subr.bf16.mxu0 %v671_v22  ;;  %v771_v21 = vpack.c.bf16 %v387_v15, %v355_v14  ;;  %v354_v22 = vld [vmem:[#allocation7 + $0x650] sm:$0xff]  ;;  %v768_v28 = vpack.c.bf16 %v384_v19, %v352_v18  ;;  %v583_v14 = vld [vmem:[#allocation7 + $0xd78] sm:$0xff]  ;;  %v580_v18 = vld [vmem:[#allocation7 + $0xd60] sm:$0xff]  ;;  %v869_v19 = vpack.c.bf16 %v581_v12, %v549_v11 }
 0x123   :  { %v261_v11 = vld [vmem:[#allocation7 + $0x368] sm:$0xff]  ;;  %v231_v12 = vld [vmem:[#allocation7 + $0x278] sm:$0xff] }
 0x125   :  { %1209 = vmatpush1.bf16.msra.mxu1 %v668_v29  ;;  %1262 = vmatpush1.bf16.msra.mxu0 %v670_v30  ;;  %v770_v29 = vpack.c.bf16 %v386_v23, %v354_v22  ;;  %v288_v30 = vld [vmem:[#allocation7 + $0x440] sm:$0xff]  ;;  %v582_v22 = vld [vmem:[#allocation7 + $0xd70] sm:$0xff]  ;;  %v485_v23 = vld [vmem:[#allocation7 + $0xa68] sm:$0xff] }
 0x126   :  { %1300 = vmatprep.subr.bf16.mxu1 %v897_v33  ;;  %1353 = vmatprep.subr.bf16.mxu0 %v899_v35  ;;  %v739_v33 = vpack.c.bf16 %v323_v27, %v291_v26  ;;  %v290_v35 = vld [vmem:[#allocation7 + $0x450] sm:$0xff]  ;;  %v736_v41 = vpack.c.bf16 %v320_v31, %v288_v30  ;;  %v519_v26 = vld [vmem:[#allocation7 + $0xb78] sm:$0xff]  ;;  %v516_v30 = vld [vmem:[#allocation7 + $0xb60] sm:$0xff]  ;;  %v837_v31 = vpack.c.bf16 %v517_v24, %v485_v23 }
 0x127   :  { %v197_v23 = vld [vmem:[#allocation7 + $0x168] sm:$0xff]  ;;  %v167_v24 = vld [vmem:[#allocation7 + $0x78] sm:$0xff] }
 0x128   :  { %1227 = vmatmul.mubr.bf16.vlgmr.msra.gmra.mxu1 %v2730_v6  ;;  %1280 = vmatmul.mubr.bf16.vlgmr.msra.gmra.mxu0 %v2730_v6 }
 0x129   :  { %1301 = vmatpush1.bf16.msra.mxu1 %v896_v42  ;;  %1354 = vmatpush1.bf16.msra.mxu0 %v898_v43  ;;  %v738_v42 = vpack.c.bf16 %v322_v36, %v290_v35  ;;  %v224_v43 = vld [vmem:[#allocation7 + $0x240] sm:$0xff]  ;;  %v518_v35 = vld [vmem:[#allocation7 + $0xb70] sm:$0xff]  ;;  %v421_v36 = vld [vmem:[#allocation7 + $0x868] sm:$0xff] }
 0x12a   :  { %1302 = vmatprep.subr.bf16.mxu1 %v865_v46  ;;  %1355 = vmatprep.subr.bf16.mxu0 %v867_v48  ;;  %v707_v46 = vpack.c.bf16 %v259_v40, %v227_v39  ;;  %v226_v48 = vld [vmem:[#allocation7 + $0x250] sm:$0xff]  ;;  %v704_v54 = vpack.c.bf16 %v256_v44, %v224_v43  ;;  %v455_v39 = vld [vmem:[#allocation7 + $0x978] sm:$0xff]  ;;  %v452_v43 = vld [vmem:[#allocation7 + $0x960] sm:$0xff]  ;;  %v805_v44 = vpack.c.bf16 %v453_v37, %v421_v36 }
 0x12b   :  { %1236 = vmatprep.mubr.bf16.mxu1 %v2668_v47  ;;  %1289 = vmatprep.mubr.bf16.mxu0 %v2668_v47  ;;  %v649_v36 = vld [vmem:[#allocation7 + $0xf88] sm:$0xff]  ;;  %v619_v37 = vld [vmem:[#allocation7 + $0xe98] sm:$0xff] }
 0x12d   :  { %1303 = vmatpush1.bf16.msra.mxu1 %v864_v55  ;;  %1356 = vmatpush1.bf16.msra.mxu0 %v866_v56  ;;  %v706_v55 = vpack.c.bf16 %v258_v49, %v226_v48  ;;  %v160_v56 = vld [vmem:[#allocation7 + $0x40] sm:$0xff]  ;;  %v454_v48 = vld [vmem:[#allocation7 + $0x970] sm:$0xff]  ;;  %v357_v49 = vld [vmem:[#allocation7 + $0x668] sm:$0xff] }
 0x12e   :  { %1304 = vmatprep.subr.bf16.mxu1 %v833_v59  ;;  %1357 = vmatprep.subr.bf16.mxu0 %v835_v60  ;;  %v675_v59 = vpack.c.bf16 %v195_v53, %v163_v52  ;;  %v162_v60 = vld [vmem:[#allocation7 + $0x50] sm:$0xff]  ;;  %v672_v2 = vpack.c.bf16 %v192_v57, %v160_v56  ;;  %v391_v52 = vld [vmem:[#allocation7 + $0x778] sm:$0xff]  ;;  %v388_v56 = vld [vmem:[#allocation7 + $0x760] sm:$0xff]  ;;  %v773_v57 = vpack.c.bf16 %v389_v50, %v357_v49 }
 0x12f   :  { %v585_v49 = vld [vmem:[#allocation7 + $0xd88] sm:$0xff]  ;;  %v555_v50 = vld [vmem:[#allocation7 + $0xc98] sm:$0xff] }
 0x130   :  { %1237 = vmatmul.mubr.bf16.gmra.mxu1 %v2736_v34  ;;  %1290 = vmatmul.mubr.bf16.gmra.mxu0 %v2736_v34 }
 0x131   :  { %1305 = vmatpush1.bf16.msra.mxu1 %v832_v3  ;;  %1358 = vmatpush1.bf16.msra.mxu0 %v834_v4  ;;  %v674_v3 = vpack.c.bf16 %v194_v61, %v162_v60  ;;  %v612_v4 = vld [vmem:[#allocation7 + $0xe60] sm:$0xff]  ;;  %v390_v60 = vld [vmem:[#allocation7 + $0x770] sm:$0xff]  ;;  %v293_v61 = vld [vmem:[#allocation7 + $0x468] sm:$0xff] }
 0x132   :  { %1306 = vmatprep.subr.bf16.mxu1 %v801_v8  ;;  %1359 = vmatprep.subr.bf16.mxu0 %v803_v9  ;;  %v903_v8 = vpack.c.bf16 %v647_v1, %v615_v0  ;;  %v614_v9 = vld [vmem:[#allocation7 + $0xe70] sm:$0xff]  ;;  %v900_v15 = vpack.c.bf16 %v644_v5, %v612_v4  ;;  %v327_v0 = vld [vmem:[#allocation7 + $0x578] sm:$0xff]  ;;  %v324_v4 = vld [vmem:[#allocation7 + $0x560] sm:$0xff]  ;;  %v741_v5 = vpack.c.bf16 %v325_v62, %v293_v61 }
 0x133   :  { %1332 = vmatprep.mubr.bf16.mxu1 %v2668_v47  ;;  %1385 = vmatprep.mubr.bf16.mxu0 %v2668_v47  ;;  %v521_v61 = vld [vmem:[#allocation7 + $0xb88] sm:$0xff]  ;;  %v491_v62 = vld [vmem:[#allocation7 + $0xa98] sm:$0xff] }
 0x135   :  { %1307 = vmatpush1.bf16.msra.mxu1 %v800_v16  ;;  %1360 = vmatpush1.bf16.msra.mxu0 %v802_v17  ;;  %v902_v16 = vpack.c.bf16 %v646_v10, %v614_v9  ;;  %v548_v17 = vld [vmem:[#allocation7 + $0xc60] sm:$0xff]  ;;  %v326_v9 = vld [vmem:[#allocation7 + $0x570] sm:$0xff]  ;;  %v229_v10 = vld [vmem:[#allocation7 + $0x268] sm:$0xff] }
 0x136   :  { %1308 = vmatprep.subr.bf16.mxu1 %v769_v20  ;;  %1361 = vmatprep.subr.bf16.mxu0 %v771_v21  ;;  %v871_v20 = vpack.c.bf16 %v583_v14, %v551_v13  ;;  %v550_v21 = vld [vmem:[#allocation7 + $0xc70] sm:$0xff]  ;;  %v868_v27 = vpack.c.bf16 %v580_v18, %v548_v17  ;;  %v263_v13 = vld [vmem:[#allocation7 + $0x378] sm:$0xff]  ;;  %v260_v17 = vld [vmem:[#allocation7 + $0x360] sm:$0xff]  ;;  %v709_v18 = vpack.c.bf16 %v261_v11, %v229_v10 }
 0x137   :  { %v457_v10 = vld [vmem:[#allocation7 + $0x988] sm:$0xff]  ;;  %v427_v11 = vld [vmem:[#allocation7 + $0x898] sm:$0xff] }
 0x139   :  { %1309 = vmatpush1.bf16.msra.mxu1 %v768_v28  ;;  %1362 = vmatpush1.bf16.msra.mxu0 %v770_v29  ;;  %v870_v28 = vpack.c.bf16 %v582_v22, %v550_v21  ;;  %v484_v29 = vld [vmem:[#allocation7 + $0xa60] sm:$0xff]  ;;  %v262_v21 = vld [vmem:[#allocation7 + $0x370] sm:$0xff]  ;;  %v165_v22 = vld [vmem:[#allocation7 + $0x68] sm:$0xff] }
 0x13a   :  { %1310 = vmatprep.subr.bf16.mxu1 %v737_v32  ;;  %1363 = vmatprep.subr.bf16.mxu0 %v739_v33  ;;  %v839_v32 = vpack.c.bf16 %v519_v26, %v487_v25  ;;  %v486_v33 = vld [vmem:[#allocation7 + $0xa70] sm:$0xff]  ;;  %v836_v40 = vpack.c.bf16 %v516_v30, %v484_v29  ;;  %v199_v25 = vld [vmem:[#allocation7 + $0x178] sm:$0xff]  ;;  %v196_v29 = vld [vmem:[#allocation7 + $0x160] sm:$0xff]  ;;  %v677_v30 = vpack.c.bf16 %v197_v23, %v165_v22 }
 0x13b   :  { %v393_v22 = vld [vmem:[#allocation7 + $0x788] sm:$0xff]  ;;  %v363_v23 = vld [vmem:[#allocation7 + $0x698] sm:$0xff] }
 0x13d   :  { %1311 = vmatpush1.bf16.msra.mxu1 %v736_v41  ;;  %1364 = vmatpush1.bf16.msra.mxu0 %v738_v42  ;;  %v838_v41 = vpack.c.bf16 %v518_v35, %v486_v33  ;;  %v420_v42 = vld [vmem:[#allocation7 + $0x860] sm:$0xff]  ;;  %v198_v33 = vld [vmem:[#allocation7 + $0x170] sm:$0xff]  ;;  %v617_v35 = vld [vmem:[#allocation7 + $0xe88] sm:$0xff] }
 0x13e   :  { %1312 = vmatprep.subr.bf16.mxu1 %v705_v45  ;;  %1365 = vmatprep.subr.bf16.mxu0 %v707_v46  ;;  %v807_v45 = vpack.c.bf16 %v455_v39, %v423_v38  ;;  %v422_v46 = vld [vmem:[#allocation7 + $0x870] sm:$0xff]  ;;  %v804_v53 = vpack.c.bf16 %v452_v43, %v420_v42  ;;  %v651_v38 = vld [vmem:[#allocation7 + $0xf98] sm:$0xff]  ;;  %v648_v42 = vld [vmem:[#allocation7 + $0xf80] sm:$0xff]  ;;  %v905_v43 = vpack.c.bf16 %v649_v36, %v617_v35 }
 0x13f   :  { %v329_v35 = vld [vmem:[#allocation7 + $0x588] sm:$0xff]  ;;  %v299_v36 = vld [vmem:[#allocation7 + $0x498] sm:$0xff] }
 0x141   :  { %1313 = vmatpush1.bf16.msra.mxu1 %v704_v54  ;;  %1366 = vmatpush1.bf16.msra.mxu0 %v706_v55  ;;  %v806_v54 = vpack.c.bf16 %v454_v48, %v422_v46  ;;  %v356_v55 = vld [vmem:[#allocation7 + $0x660] sm:$0xff]  ;;  %v650_v46 = vld [vmem:[#allocation7 + $0xf90] sm:$0xff]  ;;  %v553_v48 = vld [vmem:[#allocation7 + $0xc88] sm:$0xff] }
 0x142   :  { %1314 = vmatprep.subr.bf16.mxu1 %v673_v58  ;;  %1367 = vmatprep.subr.bf16.mxu0 %v675_v59  ;;  %v775_v58 = vpack.c.bf16 %v391_v52, %v359_v51  ;;  %v358_v59 = vld [vmem:[#allocation7 + $0x670] sm:$0xff]  ;;  %v772_v1 = vpack.c.bf16 %v388_v56, %v356_v55  ;;  %v587_v51 = vld [vmem:[#allocation7 + $0xd98] sm:$0xff]  ;;  %v584_v55 = vld [vmem:[#allocation7 + $0xd80] sm:$0xff]  ;;  %v873_v56 = vpack.c.bf16 %v585_v49, %v553_v48 }
 0x143   :  { %v265_v48 = vld [vmem:[#allocation7 + $0x388] sm:$0xff]  ;;  %v235_v49 = vld [vmem:[#allocation7 + $0x298] sm:$0xff] }
 0x145   :  { %1315 = vmatpush1.bf16.msra.mxu1 %v672_v2  ;;  %1368 = vmatpush1.bf16.msra.mxu0 %v674_v3  ;;  %v774_v2 = vpack.c.bf16 %v390_v60, %v358_v59  ;;  %v292_v3 = vld [vmem:[#allocation7 + $0x460] sm:$0xff]  ;;  %v586_v59 = vld [vmem:[#allocation7 + $0xd90] sm:$0xff]  ;;  %v489_v60 = vld [vmem:[#allocation7 + $0xa88] sm:$0xff] }
 0x146   :  { %1406 = vmatprep.subr.bf16.mxu1 %v901_v7  ;;  %1459 = vmatprep.subr.bf16.mxu0 %v903_v8  ;;  %v743_v7 = vpack.c.bf16 %v327_v0, %v295_v63  ;;  %v294_v8 = vld [vmem:[#allocation7 + $0x470] sm:$0xff]  ;;  %v740_v14 = vpack.c.bf16 %v324_v4, %v292_v3  ;;  %v523_v63 = vld [vmem:[#allocation7 + $0xb98] sm:$0xff]  ;;  %v520_v3 = vld [vmem:[#allocation7 + $0xb80] sm:$0xff]  ;;  %v841_v4 = vpack.c.bf16 %v521_v61, %v489_v60 }
 0x147   :  { %v201_v60 = vld [vmem:[#allocation7 + $0x188] sm:$0xff]  ;;  %v171_v61 = vld [vmem:[#allocation7 + $0x98] sm:$0xff] }
 0x148   :  { %1333 = vmatmul.mubr.bf16.vlgmr.msra.gmra.mxu1 %v2730_v6  ;;  %1386 = vmatmul.mubr.bf16.vlgmr.msra.gmra.mxu0 %v2730_v6 }
 0x149   :  { %1407 = vmatpush1.bf16.msra.mxu1 %v900_v15  ;;  %1460 = vmatpush1.bf16.msra.mxu0 %v902_v16  ;;  %v742_v15 = vpack.c.bf16 %v326_v9, %v294_v8  ;;  %v228_v16 = vld [vmem:[#allocation7 + $0x260] sm:$0xff]  ;;  %v522_v8 = vld [vmem:[#allocation7 + $0xb90] sm:$0xff]  ;;  %v425_v9 = vld [vmem:[#allocation7 + $0x888] sm:$0xff] }
 0x14a   :  { %1408 = vmatprep.subr.bf16.mxu1 %v869_v19  ;;  %1461 = vmatprep.subr.bf16.mxu0 %v871_v20  ;;  %v711_v19 = vpack.c.bf16 %v263_v13, %v231_v12  ;;  %v230_v20 = vld [vmem:[#allocation7 + $0x270] sm:$0xff]  ;;  %v708_v26 = vpack.c.bf16 %v260_v17, %v228_v16  ;;  %v459_v12 = vld [vmem:[#allocation7 + $0x998] sm:$0xff]  ;;  %v456_v16 = vld [vmem:[#allocation7 + $0x980] sm:$0xff]  ;;  %v809_v17 = vpack.c.bf16 %v457_v10, %v425_v9 }
 0x14b   :  { %1342 = vmatprep.mubr.bf16.mxu1 %v2668_v47  ;;  %1395 = vmatprep.mubr.bf16.mxu0 %v2668_v47  ;;  %v653_v9 = vld [vmem:[#allocation7 + $0xfa8] sm:$0xff]  ;;  %v623_v10 = vld [vmem:[#allocation7 + $0xeb8] sm:$0xff] }
 0x14d   :  { %1409 = vmatpush1.bf16.msra.mxu1 %v868_v27  ;;  %1462 = vmatpush1.bf16.msra.mxu0 %v870_v28  ;;  %v710_v27 = vpack.c.bf16 %v262_v21, %v230_v20  ;;  %v164_v28 = vld [vmem:[#allocation7 + $0x60] sm:$0xff]  ;;  %v458_v20 = vld [vmem:[#allocation7 + $0x990] sm:$0xff]  ;;  %v361_v21 = vld [vmem:[#allocation7 + $0x688] sm:$0xff] }
 0x14e   :  { %1410 = vmatprep.subr.bf16.mxu1 %v837_v31  ;;  %1463 = vmatprep.subr.bf16.mxu0 %v839_v32  ;;  %v679_v31 = vpack.c.bf16 %v199_v25, %v167_v24  ;;  %v166_v32 = vld [vmem:[#allocation7 + $0x70] sm:$0xff]  ;;  %v676_v39 = vpack.c.bf16 %v196_v29, %v164_v28  ;;  %v395_v24 = vld [vmem:[#allocation7 + $0x798] sm:$0xff]  ;;  %v392_v28 = vld [vmem:[#allocation7 + $0x780] sm:$0xff]  ;;  %v777_v29 = vpack.c.bf16 %v393_v22, %v361_v21 }
 0x14f   :  { %v589_v21 = vld [vmem:[#allocation7 + $0xda8] sm:$0xff]  ;;  %v559_v22 = vld [vmem:[#allocation7 + $0xcb8] sm:$0xff] }
 0x150   :  { %1343 = vmatmul.mubr.bf16.gmra.mxu1 %v2736_v34  ;;  %1396 = vmatmul.mubr.bf16.gmra.mxu0 %v2736_v34 }
 0x151   :  { %1411 = vmatpush1.bf16.msra.mxu1 %v836_v40  ;;  %1464 = vmatpush1.bf16.msra.mxu0 %v838_v41  ;;  %v678_v40 = vpack.c.bf16 %v198_v33, %v166_v32  ;;  %v616_v41 = vld [vmem:[#allocation7 + $0xe80] sm:$0xff]  ;;  %v394_v32 = vld [vmem:[#allocation7 + $0x790] sm:$0xff]  ;;  %v297_v33 = vld [vmem:[#allocation7 + $0x488] sm:$0xff] }
 0x152   :  { %1412 = vmatprep.subr.bf16.mxu1 %v805_v44  ;;  %1465 = vmatprep.subr.bf16.mxu0 %v807_v45  ;;  %v907_v44 = vpack.c.bf16 %v651_v38, %v619_v37  ;;  %v618_v45 = vld [vmem:[#allocation7 + $0xe90] sm:$0xff]  ;;  %v904_v52 = vpack.c.bf16 %v648_v42, %v616_v41  ;;  %v331_v37 = vld [vmem:[#allocation7 + $0x598] sm:$0xff]  ;;  %v328_v41 = vld [vmem:[#allocation7 + $0x580] sm:$0xff]  ;;  %v745_v42 = vpack.c.bf16 %v329_v35, %v297_v33 }
 0x153   :  { %1438 = vmatprep.mubr.bf16.mxu1 %v2668_v47  ;;  %1491 = vmatprep.mubr.bf16.mxu0 %v2668_v47  ;;  %v525_v33 = vld [vmem:[#allocation7 + $0xba8] sm:$0xff]  ;;  %v495_v35 = vld [vmem:[#allocation7 + $0xab8] sm:$0xff] }
 0x155   :  { %1413 = vmatpush1.bf16.msra.mxu1 %v804_v53  ;;  %1466 = vmatpush1.bf16.msra.mxu0 %v806_v54  ;;  %v906_v53 = vpack.c.bf16 %v650_v46, %v618_v45  ;;  %v552_v54 = vld [vmem:[#allocation7 + $0xc80] sm:$0xff]  ;;  %v330_v45 = vld [vmem:[#allocation7 + $0x590] sm:$0xff]  ;;  %v233_v46 = vld [vmem:[#allocation7 + $0x288] sm:$0xff] }
 0x156   :  { %1414 = vmatprep.subr.bf16.mxu1 %v773_v57  ;;  %1467 = vmatprep.subr.bf16.mxu0 %v775_v58  ;;  %v875_v57 = vpack.c.bf16 %v587_v51, %v555_v50  ;;  %v554_v58 = vld [vmem:[#allocation7 + $0xc90] sm:$0xff]  ;;  %v872_v0 = vpack.c.bf16 %v584_v55, %v552_v54  ;;  %v267_v50 = vld [vmem:[#allocation7 + $0x398] sm:$0xff]  ;;  %v264_v54 = vld [vmem:[#allocation7 + $0x380] sm:$0xff]  ;;  %v713_v55 = vpack.c.bf16 %v265_v48, %v233_v46 }
 0x157   :  { %v461_v46 = vld [vmem:[#allocation7 + $0x9a8] sm:$0xff]  ;;  %v431_v48 = vld [vmem:[#allocation7 + $0x8b8] sm:$0xff] }
 0x159   :  { %1415 = vmatpush1.bf16.msra.mxu1 %v772_v1  ;;  %1468 = vmatpush1.bf16.msra.mxu0 %v774_v2  ;;  %v874_v1 = vpack.c.bf16 %v586_v59, %v554_v58  ;;  %v488_v2 = vld [vmem:[#allocation7 + $0xa80] sm:$0xff]  ;;  %v266_v58 = vld [vmem:[#allocation7 + $0x390] sm:$0xff]  ;;  %v169_v59 = vld [vmem:[#allocation7 + $0x88] sm:$0xff] }
 0x15a   :  { %1416 = vmatprep.subr.bf16.mxu1 %v741_v5  ;;  %1469 = vmatprep.subr.bf16.mxu0 %v743_v7  ;;  %v843_v5 = vpack.c.bf16 %v523_v63, %v491_v62  ;;  %v490_v7 = vld [vmem:[#allocation7 + $0xa90] sm:$0xff]  ;;  %v840_v13 = vpack.c.bf16 %v520_v3, %v488_v2  ;;  %v203_v62 = vld [vmem:[#allocation7 + $0x198] sm:$0xff]  ;;  %v200_v2 = vld [vmem:[#allocation7 + $0x180] sm:$0xff]  ;;  %v681_v3 = vpack.c.bf16 %v201_v60, %v169_v59 }
 0x15b   :  { %v397_v59 = vld [vmem:[#allocation7 + $0x7a8] sm:$0xff]  ;;  %v367_v60 = vld [vmem:[#allocation7 + $0x6b8] sm:$0xff] }
 0x15d   :  { %1417 = vmatpush1.bf16.msra.mxu1 %v740_v14  ;;  %1470 = vmatpush1.bf16.msra.mxu0 %v742_v15  ;;  %v842_v14 = vpack.c.bf16 %v522_v8, %v490_v7  ;;  %v424_v15 = vld [vmem:[#allocation7 + $0x880] sm:$0xff]  ;;  %v202_v7 = vld [vmem:[#allocation7 + $0x190] sm:$0xff]  ;;  %v621_v8 = vld [vmem:[#allocation7 + $0xea8] sm:$0xff] }
 0x15e   :  { %1418 = vmatprep.subr.bf16.mxu1 %v709_v18  ;;  %1471 = vmatprep.subr.bf16.mxu0 %v711_v19  ;;  %v811_v18 = vpack.c.bf16 %v459_v12, %v427_v11  ;;  %v426_v19 = vld [vmem:[#allocation7 + $0x890] sm:$0xff]  ;;  %v808_v25 = vpack.c.bf16 %v456_v16, %v424_v15  ;;  %v655_v11 = vld [vmem:[#allocation7 + $0xfb8] sm:$0xff]  ;;  %v652_v15 = vld [vmem:[#allocation7 + $0xfa0] sm:$0xff]  ;;  %v909_v16 = vpack.c.bf16 %v653_v9, %v621_v8 }
 0x15f   :  { %v333_v8 = vld [vmem:[#allocation7 + $0x5a8] sm:$0xff]  ;;  %v303_v9 = vld [vmem:[#allocation7 + $0x4b8] sm:$0xff] }
 0x161   :  { %1419 = vmatpush1.bf16.msra.mxu1 %v708_v26  ;;  %1472 = vmatpush1.bf16.msra.mxu0 %v710_v27  ;;  %v810_v26 = vpack.c.bf16 %v458_v20, %v426_v19  ;;  %v360_v27 = vld [vmem:[#allocation7 + $0x680] sm:$0xff]  ;;  %v654_v19 = vld [vmem:[#allocation7 + $0xfb0] sm:$0xff]  ;;  %v557_v20 = vld [vmem:[#allocation7 + $0xca8] sm:$0xff] }
 0x162   :  { %1420 = vmatprep.subr.bf16.mxu1 %v677_v30  ;;  %1473 = vmatprep.subr.bf16.mxu0 %v679_v31  ;;  %v779_v30 = vpack.c.bf16 %v395_v24, %v363_v23  ;;  %v362_v31 = vld [vmem:[#allocation7 + $0x690] sm:$0xff]  ;;  %v776_v38 = vpack.c.bf16 %v392_v28, %v360_v27  ;;  %v591_v23 = vld [vmem:[#allocation7 + $0xdb8] sm:$0xff]  ;;  %v588_v27 = vld [vmem:[#allocation7 + $0xda0] sm:$0xff]  ;;  %v877_v28 = vpack.c.bf16 %v589_v21, %v557_v20 }
 0x163   :  { %v269_v20 = vld [vmem:[#allocation7 + $0x3a8] sm:$0xff]  ;;  %v239_v21 = vld [vmem:[#allocation7 + $0x2b8] sm:$0xff] }
 0x165   :  { %1421 = vmatpush1.bf16.msra.mxu1 %v676_v39  ;;  %1474 = vmatpush1.bf16.msra.mxu0 %v678_v40  ;;  %v778_v39 = vpack.c.bf16 %v394_v32, %v362_v31  ;;  %v296_v40 = vld [vmem:[#allocation7 + $0x480] sm:$0xff]  ;;  %v590_v31 = vld [vmem:[#allocation7 + $0xdb0] sm:$0xff]  ;;  %v493_v32 = vld [vmem:[#allocation7 + $0xaa8] sm:$0xff] }
 0x166   :  { %1512 = vmatprep.subr.bf16.mxu1 %v905_v43  ;;  %1565 = vmatprep.subr.bf16.mxu0 %v907_v44  ;;  %v747_v43 = vpack.c.bf16 %v331_v37, %v299_v36  ;;  %v298_v44 = vld [vmem:[#allocation7 + $0x490] sm:$0xff]  ;;  %v744_v51 = vpack.c.bf16 %v328_v41, %v296_v40  ;;  %v527_v36 = vld [vmem:[#allocation7 + $0xbb8] sm:$0xff]  ;;  %v524_v40 = vld [vmem:[#allocation7 + $0xba0] sm:$0xff]  ;;  %v845_v41 = vpack.c.bf16 %v525_v33, %v493_v32 }
 0x167   :  { %v205_v32 = vld [vmem:[#allocation7 + $0x1a8] sm:$0xff]  ;;  %v175_v33 = vld [vmem:[#allocation7 + $0xb8] sm:$0xff] }
 0x168   :  { %1439 = vmatmul.mubr.bf16.vlgmr.msra.gmra.mxu1 %v2730_v6  ;;  %1492 = vmatmul.mubr.bf16.vlgmr.msra.gmra.mxu0 %v2730_v6 }
 0x169   :  { %1513 = vmatpush1.bf16.msra.mxu1 %v904_v52  ;;  %1566 = vmatpush1.bf16.msra.mxu0 %v906_v53  ;;  %v746_v52 = vpack.c.bf16 %v330_v45, %v298_v44  ;;  %v232_v53 = vld [vmem:[#allocation7 + $0x280] sm:$0xff]  ;;  %v526_v44 = vld [vmem:[#allocation7 + $0xbb0] sm:$0xff]  ;;  %v429_v45 = vld [vmem:[#allocation7 + $0x8a8] sm:$0xff] }
 0x16a   :  { %1514 = vmatprep.subr.bf16.mxu1 %v873_v56  ;;  %1567 = vmatprep.subr.bf16.mxu0 %v875_v57  ;;  %v715_v56 = vpack.c.bf16 %v267_v50, %v235_v49  ;;  %v234_v57 = vld [vmem:[#allocation7 + $0x290] sm:$0xff]  ;;  %v712_v63 = vpack.c.bf16 %v264_v54, %v232_v53  ;;  %v463_v49 = vld [vmem:[#allocation7 + $0x9b8] sm:$0xff]  ;;  %v460_v53 = vld [vmem:[#allocation7 + $0x9a0] sm:$0xff]  ;;  %v813_v54 = vpack.c.bf16 %v461_v46, %v429_v45 }
 0x16b   :  { %1448 = vmatprep.mubr.bf16.mxu1 %v2668_v47  ;;  %1501 = vmatprep.mubr.bf16.mxu0 %v2668_v47  ;;  %v657_v45 = vld [vmem:[#allocation7 + $0xfc8] sm:$0xff]  ;;  %v627_v46 = vld [vmem:[#allocation7 + $0xed8] sm:$0xff] }
 0x16d   :  { %1515 = vmatpush1.bf16.msra.mxu1 %v872_v0  ;;  %1568 = vmatpush1.bf16.msra.mxu0 %v874_v1  ;;  %v714_v0 = vpack.c.bf16 %v266_v58, %v234_v57  ;;  %v168_v1 = vld [vmem:[#allocation7 + $0x80] sm:$0xff]  ;;  %v462_v57 = vld [vmem:[#allocation7 + $0x9b0] sm:$0xff]  ;;  %v365_v58 = vld [vmem:[#allocation7 + $0x6a8] sm:$0xff] }
 0x16e   :  { %1516 = vmatprep.subr.bf16.mxu1 %v841_v4  ;;  %1569 = vmatprep.subr.bf16.mxu0 %v843_v5  ;;  %v683_v4 = vpack.c.bf16 %v203_v62, %v171_v61  ;;  %v170_v5 = vld [vmem:[#allocation7 + $0x90] sm:$0xff]  ;;  %v680_v12 = vpack.c.bf16 %v200_v2, %v168_v1  ;;  %v399_v61 = vld [vmem:[#allocation7 + $0x7b8] sm:$0xff]  ;;  %v396_v1 = vld [vmem:[#allocation7 + $0x7a0] sm:$0xff]  ;;  %v781_v2 = vpack.c.bf16 %v397_v59, %v365_v58 }
 0x16f   :  { %v593_v58 = vld [vmem:[#allocation7 + $0xdc8] sm:$0xff]  ;;  %v563_v59 = vld [vmem:[#allocation7 + $0xcd8] sm:$0xff] }
 0x170   :  { %1449 = vmatmul.mubr.bf16.gmra.mxu1 %v2736_v34  ;;  %1502 = vmatmul.mubr.bf16.gmra.mxu0 %v2736_v34 }
 0x171   :  { %1517 = vmatpush1.bf16.msra.mxu1 %v840_v13  ;;  %1570 = vmatpush1.bf16.msra.mxu0 %v842_v14  ;;  %v682_v13 = vpack.c.bf16 %v202_v7, %v170_v5  ;;  %v620_v14 = vld [vmem:[#allocation7 + $0xea0] sm:$0xff]  ;;  %v398_v5 = vld [vmem:[#allocation7 + $0x7b0] sm:$0xff]  ;;  %v301_v7 = vld [vmem:[#allocation7 + $0x4a8] sm:$0xff] }
 0x172   :  { %1518 = vmatprep.subr.bf16.mxu1 %v809_v17  ;;  %1571 = vmatprep.subr.bf16.mxu0 %v811_v18  ;;  %v911_v17 = vpack.c.bf16 %v655_v11, %v623_v10  ;;  %v622_v18 = vld [vmem:[#allocation7 + $0xeb0] sm:$0xff]  ;;  %v908_v24 = vpack.c.bf16 %v652_v15, %v620_v14  ;;  %v335_v10 = vld [vmem:[#allocation7 + $0x5b8] sm:$0xff]  ;;  %v332_v14 = vld [vmem:[#allocation7 + $0x5a0] sm:$0xff]  ;;  %v749_v15 = vpack.c.bf16 %v333_v8, %v301_v7 }
 0x173   :  { %1544 = vmatprep.mubr.bf16.mxu1 %v2668_v47  ;;  %1597 = vmatprep.mubr.bf16.mxu0 %v2668_v47  ;;  %v529_v7 = vld [vmem:[#allocation7 + $0xbc8] sm:$0xff]  ;;  %v499_v8 = vld [vmem:[#allocation7 + $0xad8] sm:$0xff] }
 0x175   :  { %1519 = vmatpush1.bf16.msra.mxu1 %v808_v25  ;;  %1572 = vmatpush1.bf16.msra.mxu0 %v810_v26  ;;  %v910_v25 = vpack.c.bf16 %v654_v19, %v622_v18  ;;  %v556_v26 = vld [vmem:[#allocation7 + $0xca0] sm:$0xff]  ;;  %v334_v18 = vld [vmem:[#allocation7 + $0x5b0] sm:$0xff]  ;;  %v237_v19 = vld [vmem:[#allocation7 + $0x2a8] sm:$0xff] }
 0x176   :  { %1520 = vmatprep.subr.bf16.mxu1 %v777_v29  ;;  %1573 = vmatprep.subr.bf16.mxu0 %v779_v30  ;;  %v879_v29 = vpack.c.bf16 %v591_v23, %v559_v22  ;;  %v558_v30 = vld [vmem:[#allocation7 + $0xcb0] sm:$0xff]  ;;  %v876_v37 = vpack.c.bf16 %v588_v27, %v556_v26  ;;  %v271_v22 = vld [vmem:[#allocation7 + $0x3b8] sm:$0xff]  ;;  %v268_v26 = vld [vmem:[#allocation7 + $0x3a0] sm:$0xff]  ;;  %v717_v27 = vpack.c.bf16 %v269_v20, %v237_v19 }
 0x177   :  { %v465_v19 = vld [vmem:[#allocation7 + $0x9c8] sm:$0xff]  ;;  %v435_v20 = vld [vmem:[#allocation7 + $0x8d8] sm:$0xff] }
 0x179   :  { %1521 = vmatpush1.bf16.msra.mxu1 %v776_v38  ;;  %1574 = vmatpush1.bf16.msra.mxu0 %v778_v39  ;;  %v878_v38 = vpack.c.bf16 %v590_v31, %v558_v30  ;;  %v492_v39 = vld [vmem:[#allocation7 + $0xaa0] sm:$0xff]  ;;  %v270_v30 = vld [vmem:[#allocation7 + $0x3b0] sm:$0xff]  ;;  %v173_v31 = vld [vmem:[#allocation7 + $0xa8] sm:$0xff] }
 0x17a   :  { %1522 = vmatprep.subr.bf16.mxu1 %v745_v42  ;;  %1575 = vmatprep.subr.bf16.mxu0 %v747_v43  ;;  %v847_v42 = vpack.c.bf16 %v527_v36, %v495_v35  ;;  %v494_v43 = vld [vmem:[#allocation7 + $0xab0] sm:$0xff]  ;;  %v844_v50 = vpack.c.bf16 %v524_v40, %v492_v39  ;;  %v207_v35 = vld [vmem:[#allocation7 + $0x1b8] sm:$0xff]  ;;  %v204_v39 = vld [vmem:[#allocation7 + $0x1a0] sm:$0xff]  ;;  %v685_v40 = vpack.c.bf16 %v205_v32, %v173_v31 }
 0x17b   :  { %v401_v31 = vld [vmem:[#allocation7 + $0x7c8] sm:$0xff]  ;;  %v371_v32 = vld [vmem:[#allocation7 + $0x6d8] sm:$0xff] }
 0x17d   :  { %1523 = vmatpush1.bf16.msra.mxu1 %v744_v51  ;;  %1576 = vmatpush1.bf16.msra.mxu0 %v746_v52  ;;  %v846_v51 = vpack.c.bf16 %v526_v44, %v494_v43  ;;  %v428_v52 = vld [vmem:[#allocation7 + $0x8a0] sm:$0xff]  ;;  %v206_v43 = vld [vmem:[#allocation7 + $0x1b0] sm:$0xff]  ;;  %v625_v44 = vld [vmem:[#allocation7 + $0xec8] sm:$0xff] }
 0x17e   :  { %1524 = vmatprep.subr.bf16.mxu1 %v713_v55  ;;  %1577 = vmatprep.subr.bf16.mxu0 %v715_v56  ;;  %v815_v55 = vpack.c.bf16 %v463_v49, %v431_v48  ;;  %v430_v56 = vld [vmem:[#allocation7 + $0x8b0] sm:$0xff]  ;;  %v812_v62 = vpack.c.bf16 %v460_v53, %v428_v52  ;;  %v659_v48 = vld [vmem:[#allocation7 + $0xfd8] sm:$0xff]  ;;  %v656_v52 = vld [vmem:[#allocation7 + $0xfc0] sm:$0xff]  ;;  %v913_v53 = vpack.c.bf16 %v657_v45, %v625_v44 }
 0x17f   :  { %v337_v44 = vld [vmem:[#allocation7 + $0x5c8] sm:$0xff]  ;;  %v307_v45 = vld [vmem:[#allocation7 + $0x4d8] sm:$0xff] }
 0x181   :  { %1525 = vmatpush1.bf16.msra.mxu1 %v712_v63  ;;  %1578 = vmatpush1.bf16.msra.mxu0 %v714_v0  ;;  %v814_v63 = vpack.c.bf16 %v462_v57, %v430_v56  ;;  %v364_v0 = vld [vmem:[#allocation7 + $0x6a0] sm:$0xff]  ;;  %v658_v56 = vld [vmem:[#allocation7 + $0xfd0] sm:$0xff]  ;;  %v561_v57 = vld [vmem:[#allocation7 + $0xcc8] sm:$0xff] }
 0x182   :  { %1526 = vmatprep.subr.bf16.mxu1 %v681_v3  ;;  %1579 = vmatprep.subr.bf16.mxu0 %v683_v4  ;;  %v783_v3 = vpack.c.bf16 %v399_v61, %v367_v60  ;;  %v366_v4 = vld [vmem:[#allocation7 + $0x6b0] sm:$0xff]  ;;  %v780_v11 = vpack.c.bf16 %v396_v1, %v364_v0  ;;  %v595_v60 = vld [vmem:[#allocation7 + $0xdd8] sm:$0xff]  ;;  %v592_v0 = vld [vmem:[#allocation7 + $0xdc0] sm:$0xff]  ;;  %v881_v1 = vpack.c.bf16 %v593_v58, %v561_v57 }
 0x183   :  { %v273_v57 = vld [vmem:[#allocation7 + $0x3c8] sm:$0xff]  ;;  %v243_v58 = vld [vmem:[#allocation7 + $0x2d8] sm:$0xff] }
 0x185   :  { %1527 = vmatpush1.bf16.msra.mxu1 %v680_v12  ;;  %1580 = vmatpush1.bf16.msra.mxu0 %v682_v13  ;;  %v782_v12 = vpack.c.bf16 %v398_v5, %v366_v4  ;;  %v300_v13 = vld [vmem:[#allocation7 + $0x4a0] sm:$0xff]  ;;  %v594_v4 = vld [vmem:[#allocation7 + $0xdd0] sm:$0xff]  ;;  %v497_v5 = vld [vmem:[#allocation7 + $0xac8] sm:$0xff] }
 0x186   :  { %1618 = vmatprep.subr.bf16.mxu1 %v909_v16  ;;  %1671 = vmatprep.subr.bf16.mxu0 %v911_v17  ;;  %v751_v16 = vpack.c.bf16 %v335_v10, %v303_v9  ;;  %v302_v17 = vld [vmem:[#allocation7 + $0x4b0] sm:$0xff]  ;;  %v748_v23 = vpack.c.bf16 %v332_v14, %v300_v13  ;;  %v531_v9 = vld [vmem:[#allocation7 + $0xbd8] sm:$0xff]  ;;  %v528_v13 = vld [vmem:[#allocation7 + $0xbc0] sm:$0xff]  ;;  %v849_v14 = vpack.c.bf16 %v529_v7, %v497_v5  ;;  %v928_v5 = vlaneseq }
 0x187   :  { %v209_v7 = vld [vmem:[#allocation7 + $0x1c8] sm:$0xff] }
 0x188   :  { %1545 = vmatmul.mubr.bf16.vlgmr.msra.gmra.mxu1 %v2730_v6  ;;  %1598 = vmatmul.mubr.bf16.vlgmr.msra.gmra.mxu0 %v2730_v6 }
 0x189   :  { %1619 = vmatpush1.bf16.msra.mxu1 %v908_v24  ;;  %1672 = vmatpush1.bf16.msra.mxu0 %v910_v25  ;;  %v750_v24 = vpack.c.bf16 %v334_v18, %v302_v17  ;;  %v236_v25 = vld [vmem:[#allocation7 + $0x2a0] sm:$0xff]  ;;  %v530_v17 = vld [vmem:[#allocation7 + $0xbd0] sm:$0xff]  ;;  %v433_v18 = vld [vmem:[#allocation7 + $0x8c8] sm:$0xff] }
 0x18a   :  { %1620 = vmatprep.subr.bf16.mxu1 %v877_v28  ;;  %1673 = vmatprep.subr.bf16.mxu0 %v879_v29  ;;  %v719_v28 = vpack.c.bf16 %v271_v22, %v239_v21  ;;  %v238_v29 = vld [vmem:[#allocation7 + $0x2b0] sm:$0xff]  ;;  %v716_v36 = vpack.c.bf16 %v268_v26, %v236_v25  ;;  %v467_v21 = vld [vmem:[#allocation7 + $0x9d8] sm:$0xff]  ;;  %v464_v25 = vld [vmem:[#allocation7 + $0x9c0] sm:$0xff]  ;;  %v817_v26 = vpack.c.bf16 %v465_v19, %v433_v18  ;;  %v2782_v19 = vshrl.u32 %v928_v5, 7 }
 0x18b   :  { %1554 = vmatprep.mubr.bf16.mxu1 %v2668_v47  ;;  %1607 = vmatprep.mubr.bf16.mxu0 %v2668_v47  ;;  %v629_v18 = vld [vmem:[#allocation7 + $0xee8] sm:$0xff]  ;;  %v502_v5 = vld [vmem:[#allocation7 + $0xaf0] sm:$0xff] }
 0x18d   :  { %1621 = vmatpush1.bf16.msra.mxu1 %v876_v37  ;;  %1674 = vmatpush1.bf16.msra.mxu0 %v878_v38  ;;  %v718_v37 = vpack.c.bf16 %v270_v30, %v238_v29  ;;  %v172_v38 = vld [vmem:[#allocation7 + $0xa0] sm:$0xff]  ;;  %v466_v29 = vld [vmem:[#allocation7 + $0x9d0] sm:$0xff]  ;;  %v369_v30 = vld [vmem:[#allocation7 + $0x6c8] sm:$0xff] }
 0x18e   :  { %1622 = vmatprep.subr.bf16.mxu1 %v845_v41  ;;  %1675 = vmatprep.subr.bf16.mxu0 %v847_v42  ;;  %v687_v41 = vpack.c.bf16 %v207_v35, %v175_v33  ;;  %v174_v42 = vld [vmem:[#allocation7 + $0xb0] sm:$0xff]  ;;  %v684_v49 = vpack.c.bf16 %v204_v39, %v172_v38  ;;  %v403_v33 = vld [vmem:[#allocation7 + $0x7d8] sm:$0xff]  ;;  %v400_v38 = vld [vmem:[#allocation7 + $0x7c0] sm:$0xff]  ;;  %v785_v39 = vpack.c.bf16 %v401_v31, %v369_v30  ;;  %v2787_v30 = vsub.s32 0, %v2782_v19 }
 0x18f   :  { %v630_v31 = vld [vmem:[#allocation7 + $0xef0] sm:$0xff] }
 0x190   :  { %1555 = vmatmul.mubr.bf16.gmra.mxu1 %v2736_v34  ;;  %1608 = vmatmul.mubr.bf16.gmra.mxu0 %v2736_v34 }
 0x191   :  { %1623 = vmatpush1.bf16.msra.mxu1 %v844_v50  ;;  %1676 = vmatpush1.bf16.msra.mxu0 %v846_v51  ;;  %v686_v50 = vpack.c.bf16 %v206_v43, %v174_v42  ;;  %v624_v51 = vld [vmem:[#allocation7 + $0xec0] sm:$0xff]  ;;  %v402_v42 = vld [vmem:[#allocation7 + $0x7d0] sm:$0xff]  ;;  %v305_v43 = vld [vmem:[#allocation7 + $0x4c8] sm:$0xff] }
 0x192   :  { %1624 = vmatprep.subr.bf16.mxu1 %v813_v54  ;;  %1677 = vmatprep.subr.bf16.mxu0 %v815_v55  ;;  %v915_v54 = vpack.c.bf16 %v659_v48, %v627_v46  ;;  %v626_v55 = vld [vmem:[#allocation7 + $0xed0] sm:$0xff]  ;;  %v912_v61 = vpack.c.bf16 %v656_v52, %v624_v51  ;;  %v339_v46 = vld [vmem:[#allocation7 + $0x5d8] sm:$0xff]  ;;  %v336_v51 = vld [vmem:[#allocation7 + $0x5c0] sm:$0xff]  ;;  %v753_v52 = vpack.c.bf16 %v337_v44, %v305_v43 }
 0x193   :  { %1650 = vmatprep.mubr.bf16.mxu1 %v2668_v47  ;;  %1703 = vmatprep.mubr.bf16.mxu0 %v2668_v47  ;;  %v564_v43 = vld [vmem:[#allocation7 + $0xce0] sm:$0xff] }
 0x194   :  { %v596_v44 = vld [vmem:[#allocation7 + $0xde0] sm:$0xff] }
 0x195   :  { %1625 = vmatpush1.bf16.msra.mxu1 %v812_v62  ;;  %1678 = vmatpush1.bf16.msra.mxu0 %v814_v63  ;;  %v914_v62 = vpack.c.bf16 %v658_v56, %v626_v55  ;;  %v560_v63 = vld [vmem:[#allocation7 + $0xcc0] sm:$0xff]  ;;  %v338_v55 = vld [vmem:[#allocation7 + $0x5d0] sm:$0xff]  ;;  %v241_v56 = vld [vmem:[#allocation7 + $0x2c8] sm:$0xff] }
 0x196   :  { %1626 = vmatprep.subr.bf16.mxu1 %v781_v2  ;;  %1679 = vmatprep.subr.bf16.mxu0 %v783_v3  ;;  %v883_v2 = vpack.c.bf16 %v595_v60, %v563_v59  ;;  %v562_v3 = vld [vmem:[#allocation7 + $0xcd0] sm:$0xff]  ;;  %v880_v10 = vpack.c.bf16 %v592_v0, %v560_v63  ;;  %v275_v59 = vld [vmem:[#allocation7 + $0x3d8] sm:$0xff]  ;;  %v272_v63 = vld [vmem:[#allocation7 + $0x3c0] sm:$0xff]  ;;  %v721_v0 = vpack.c.bf16 %v273_v57, %v241_v56 }
 0x197   :  { %v503_v56 = vld [vmem:[#allocation7 + $0xaf8] sm:$0xff] }
 0x198   :  { %v535_v57 = vld [vmem:[#allocation7 + $0xbf8] sm:$0xff] }
 0x199   :  { %1627 = vmatpush1.bf16.msra.mxu1 %v780_v11  ;;  %1680 = vmatpush1.bf16.msra.mxu0 %v782_v12  ;;  %v882_v11 = vpack.c.bf16 %v594_v4, %v562_v3  ;;  %v496_v12 = vld [vmem:[#allocation7 + $0xac0] sm:$0xff]  ;;  %v274_v3 = vld [vmem:[#allocation7 + $0x3d0] sm:$0xff]  ;;  %v177_v4 = vld [vmem:[#allocation7 + $0xc8] sm:$0xff] }
 0x19a   :  { %1628 = vmatprep.subr.bf16.mxu1 %v749_v15  ;;  %1681 = vmatprep.subr.bf16.mxu0 %v751_v16  ;;  %v851_v15 = vpack.c.bf16 %v531_v9, %v499_v8  ;;  %v498_v16 = vld [vmem:[#allocation7 + $0xad0] sm:$0xff]  ;;  %v848_v22 = vpack.c.bf16 %v528_v13, %v496_v12  ;;  %v179_v8 = vld [vmem:[#allocation7 + $0xd8] sm:$0xff]  ;;  %v176_v12 = vld [vmem:[#allocation7 + $0xc0] sm:$0xff] }
 0x19b   :  { %v211_v9 = vld [vmem:[#allocation7 + $0x1d8] sm:$0xff]  ;;  %v208_v13 = vld [vmem:[#allocation7 + $0x1c0] sm:$0xff] }
 0x19d   :  { %1629 = vmatpush1.bf16.msra.mxu1 %v748_v23  ;;  %1682 = vmatpush1.bf16.msra.mxu0 %v750_v24  ;;  %v850_v23 = vpack.c.bf16 %v530_v17, %v498_v16  ;;  %v432_v24 = vld [vmem:[#allocation7 + $0x8c0] sm:$0xff]  ;;  %v178_v16 = vld [vmem:[#allocation7 + $0xd0] sm:$0xff] }
 0x19e   :  { %1630 = vmatprep.subr.bf16.mxu1 %v717_v27  ;;  %1683 = vmatprep.subr.bf16.mxu0 %v719_v28  ;;  %v819_v27 = vpack.c.bf16 %v467_v21, %v435_v20  ;;  %v434_v28 = vld [vmem:[#allocation7 + $0x8d0] sm:$0xff]  ;;  %v816_v35 = vpack.c.bf16 %v464_v25, %v432_v24  ;;  %v661_v20 = vld [vmem:[#allocation7 + $0xfe8] sm:$0xff]  ;;  %v631_v21 = vld [vmem:[#allocation7 + $0xef8] sm:$0xff] }
 0x19f   :  { %v210_v17 = vld [vmem:[#allocation7 + $0x1d0] sm:$0xff]  ;;  %v2784_v25 = vld [vmem:[#allocation8] sm:$0xff] }
 0x1a0   :  { %v690_v24 = vpack.c.bf16 %v210_v17, %v178_v16 }
 0x1a1   :  { %1631 = vmatpush1.bf16.msra.mxu1 %v716_v36  ;;  %1684 = vmatpush1.bf16.msra.mxu0 %v718_v37  ;;  %v818_v36 = vpack.c.bf16 %v466_v29, %v434_v28  ;;  %v368_v37 = vld [vmem:[#allocation7 + $0x6c0] sm:$0xff]  ;;  %v917_v28 = vpack.c.bf16 %v661_v20, %v629_v18 }
 0x1a2   :  { %1632 = vmatprep.subr.bf16.mxu1 %v685_v40  ;;  %1685 = vmatprep.subr.bf16.mxu0 %v687_v41  ;;  %v787_v40 = vpack.c.bf16 %v403_v33, %v371_v32  ;;  %v370_v41 = vld [vmem:[#allocation7 + $0x6d0] sm:$0xff]  ;;  %v784_v48 = vpack.c.bf16 %v400_v38, %v368_v37  ;;  %v565_v33 = vld [vmem:[#allocation7 + $0xce8] sm:$0xff]  ;;  %v2796_v37 = vsub.s32 3, %v2782_v19 }
 0x1a3   :  { %v662_v32 = vld [vmem:[#allocation7 + $0xff0] sm:$0xff]  ;;  %v597_v38 = vld [vmem:[#allocation7 + $0xde8] sm:$0xff] }
 0x1a5   :  { %1633 = vmatpush1.bf16.msra.mxu1 %v684_v49  ;;  %1686 = vmatpush1.bf16.msra.mxu0 %v686_v50  ;;  %v786_v49 = vpack.c.bf16 %v402_v42, %v370_v41  ;;  %v304_v50 = vld [vmem:[#allocation7 + $0x4c0] sm:$0xff]  ;;  %v918_v42 = vpack.c.bf16 %v662_v32, %v630_v31  ;;  %v470_v31 = vld [vmem:[#allocation7 + $0x9f0] sm:$0xff]  ;;  %v373_v32 = vld [vmem:[#allocation7 + $0x6e8] sm:$0xff] }
 0x1a6   :  { %1724 = vmatprep.subr.bf16.mxu1 %v913_v53  ;;  %1777 = vmatprep.subr.bf16.mxu0 %v915_v54  ;;  %v755_v53 = vpack.c.bf16 %v339_v46, %v307_v45  ;;  %v306_v54 = vld [vmem:[#allocation7 + $0x4d0] sm:$0xff]  ;;  %v752_v60 = vpack.c.bf16 %v336_v51, %v304_v50  ;;  %v2800_v45 = vrot.slane %v2784_v25, %v2787_v30  ;;  %v501_v51 = vld [vmem:[#allocation7 + $0xae8] sm:$0xff] }
 0x1a7   :  { %v885_v46 = vpack.c.bf16 %v597_v38, %v565_v33  ;;  %v598_v50 = vld [vmem:[#allocation7 + $0xdf0] sm:$0xff] }
 0x1a8   :  { %1651 = vmatmul.mubr.bf16.vlgmr.msra.gmra.mxu1 %v2730_v6  ;;  %1704 = vmatmul.mubr.bf16.vlgmr.msra.gmra.mxu0 %v2730_v6 }
 0x1a9   :  { %1725 = vmatpush1.bf16.msra.mxu1 %v912_v61  ;;  %1778 = vmatpush1.bf16.msra.mxu0 %v914_v62  ;;  %v754_v61 = vpack.c.bf16 %v338_v55, %v306_v54  ;;  %v240_v62 = vld [vmem:[#allocation7 + $0x2c0] sm:$0xff]  ;;  %v2812_v54 = vrot.slane %v2784_v25, %v2796_v37  ;;  %v533_v55 = vld [vmem:[#allocation7 + $0xbe8] sm:$0xff] }
 0x1aa   :  { %1726 = vmatprep.subr.bf16.mxu1 %v881_v1  ;;  %1779 = vmatprep.subr.bf16.mxu0 %v883_v2  ;;  %v723_v1 = vpack.c.bf16 %v275_v59, %v243_v58  ;;  %v242_v2 = vld [vmem:[#allocation7 + $0x2d0] sm:$0xff] }
 0x1ab   :  { %1660 = vmatprep.mubr.bf16.mxu1 %v2668_v47  ;;  %1713 = vmatprep.mubr.bf16.mxu0 %v2668_v47 }
 0x1ad   :  { %1727 = vmatpush1.bf16.msra.mxu1 %v880_v10  ;;  %1780 = vmatpush1.bf16.msra.mxu0 %v882_v11  ;;  %v720_v10 = vpack.c.bf16 %v272_v63, %v240_v62  ;;  %v722_v11 = vpack.c.bf16 %v274_v3, %v242_v2  ;;  %v500_v62 = vld [vmem:[#allocation7 + $0xae0] sm:$0xff]  ;;  %v853_v3 = vpack.c.bf16 %v533_v55, %v501_v51 }
 0x1ae   :  { %1728 = vmatprep.subr.bf16.mxu1 %v849_v14  ;;  %1781 = vmatprep.subr.bf16.mxu0 %v851_v15  ;;  %v689_v14 = vpack.c.bf16 %v209_v7, %v177_v4  ;;  %v691_v15 = vpack.c.bf16 %v211_v9, %v179_v8  ;;  %v532_v63 = vld [vmem:[#allocation7 + $0xbe0] sm:$0xff]  ;;  %v855_v4 = vpack.c.bf16 %v535_v57, %v503_v56  ;;  %v534_v7 = vld [vmem:[#allocation7 + $0xbf0] sm:$0xff]  ;;  %v437_v8 = vld [vmem:[#allocation7 + $0x8e8] sm:$0xff] }
 0x1af   :  { %v852_v20 = vpack.c.bf16 %v532_v63, %v500_v62  ;;  %v372_v55 = vld [vmem:[#allocation7 + $0x6e0] sm:$0xff]  ;;  %v374_v62 = vld [vmem:[#allocation7 + $0x6f0] sm:$0xff] }
 0x1b0   :  { %1661 = vmatmul.mubr.bf16.gmra.mxu1 %v2736_v34  ;;  %1714 = vmatmul.mubr.bf16.gmra.mxu0 %v2736_v34  ;;  %v404_v56 = vld [vmem:[#allocation7 + $0x7e0] sm:$0xff]  ;;  %v406_v63 = vld [vmem:[#allocation7 + $0x7f0] sm:$0xff] }
 0x1b1   :  { %1729 = vmatpush1.bf16.msra.mxu1 %v848_v22  ;;  %1782 = vmatpush1.bf16.msra.mxu0 %v850_v23  ;;  %v663_v22 = vld [vmem:[#allocation7 + $0xff8] sm:$0xff]  ;;  %v688_v23 = vpack.c.bf16 %v208_v13, %v176_v12  ;;  %v469_v12 = vld [vmem:[#allocation7 + $0x9e8] sm:$0xff] }
 0x1b2   :  { %1730 = vmatprep.subr.bf16.mxu1 %v817_v26  ;;  %1783 = vmatprep.subr.bf16.mxu0 %v819_v27  ;;  %v628_v26 = vld [vmem:[#allocation7 + $0xee0] sm:$0xff]  ;;  %v919_v29 = vpack.c.bf16 %v663_v22, %v631_v21  ;;  %v439_v13 = vld [vmem:[#allocation7 + $0x8f8] sm:$0xff] }
 0x1b3   :  { %1756 = vmatprep.mubr.bf16.mxu1 %v2668_v47  ;;  %1809 = vmatprep.mubr.bf16.mxu0 %v2668_v47  ;;  %v660_v27 = vld [vmem:[#allocation7 + $0xfe0] sm:$0xff] }
 0x1b4   :  { %v916_v41 = vpack.c.bf16 %v660_v27, %v628_v26  ;;  %v436_v21 = vld [vmem:[#allocation7 + $0x8e0] sm:$0xff]  ;;  %v854_v26 = vpack.c.bf16 %v534_v7, %v502_v5  ;;  %v821_v27 = vpack.c.bf16 %v469_v12, %v437_v8  ;;  %v311_v5 = vld [vmem:[#allocation7 + $0x4f8] sm:$0xff]  ;;  %v788_v12 = vpack.c.bf16 %v404_v56, %v372_v55 }
 0x1b5   :  { %1731 = vmatpush1.bf16.msra.mxu1 %v816_v35  ;;  %1784 = vmatpush1.bf16.msra.mxu0 %v818_v36  ;;  %v2790_v35 = vsub.s32 2, %v2782_v19  ;;  %v2793_v36 = vsub.s32 1, %v2782_v19  ;;  %v468_v22 = vld [vmem:[#allocation7 + $0x9e0] sm:$0xff]  ;;  %v343_v7 = vld [vmem:[#allocation7 + $0x5f8] sm:$0xff] }
 0x1b6   :  { %1732 = vmatprep.subr.bf16.mxu1 %v785_v39  ;;  %1785 = vmatprep.subr.bf16.mxu0 %v787_v40  ;;  %v567_v39 = vld [vmem:[#allocation7 + $0xcf8] sm:$0xff]  ;;  %v180_v55 = vld [vmem:[#allocation7 + $0xe0] sm:$0xff] }
 0x1b7   :  { %v599_v40 = vld [vmem:[#allocation7 + $0xdf8] sm:$0xff]  ;;  %v212_v56 = vld [vmem:[#allocation7 + $0x1e0] sm:$0xff] }
 0x1b9   :  { %1733 = vmatpush1.bf16.msra.mxu1 %v784_v48  ;;  %1786 = vmatpush1.bf16.msra.mxu0 %v786_v49  ;;  %v887_v48 = vpack.c.bf16 %v599_v40, %v567_v39  ;;  %v566_v49 = vld [vmem:[#allocation7 + $0xcf0] sm:$0xff] }
 0x1ba   :  { %1734 = vmatprep.subr.bf16.mxu1 %v753_v52  ;;  %1787 = vmatprep.subr.bf16.mxu0 %v755_v53  ;;  %v2804_v52 = vrot.slane %v2784_v25, %v2790_v35  ;;  %v2808_v53 = vrot.slane %v2784_v25, %v2793_v36 }
 0x1bd   :  { %1735 = vmatpush1.bf16.msra.mxu1 %v752_v60  ;;  %1788 = vmatpush1.bf16.msra.mxu0 %v754_v61  ;;  %v884_v60 = vpack.c.bf16 %v596_v44, %v564_v43  ;;  %v886_v61 = vpack.c.bf16 %v598_v50, %v566_v49  ;;  %v407_v43 = vld [vmem:[#allocation7 + $0x7f8] sm:$0xff]  ;;  %v820_v50 = vpack.c.bf16 %v468_v22, %v436_v21  ;;  %v310_v21 = vld [vmem:[#allocation7 + $0x4f0] sm:$0xff] }
 0x1be   :  { %1736 = vmatprep.subr.bf16.mxu1 %v721_v0  ;;  %1789 = vmatprep.subr.bf16.mxu0 %v723_v1 }
 0x1c1   :  { %1737 = vmatpush1.bf16.msra.mxu1 %v720_v10  ;;  %1790 = vmatpush1.bf16.msra.mxu0 %v722_v11 }
 0x1c2   :  { %1738 = vmatprep.subr.bf16.mxu1 %v689_v14  ;;  %1791 = vmatprep.subr.bf16.mxu0 %v691_v15  ;;  %v471_v14 = vld [vmem:[#allocation7 + $0x9f8] sm:$0xff] }
 0x1c5   :  { %1739 = vmatpush1.bf16.msra.mxu1 %v688_v23  ;;  %1792 = vmatpush1.bf16.msra.mxu0 %v690_v24 }
 0x1c6   :  { %1830 = vmatprep.subr.bf16.mxu1 %v917_v28  ;;  %1883 = vmatprep.subr.bf16.mxu0 %v919_v29  ;;  %v823_v28 = vpack.c.bf16 %v471_v14, %v439_v13  ;;  %v438_v29 = vld [vmem:[#allocation7 + $0x8f0] sm:$0xff] }
 0x1c7   :  { %v822_v51 = vpack.c.bf16 %v470_v31, %v438_v29  ;;  %v277_v29 = vld [vmem:[#allocation7 + $0x3e8] sm:$0xff]  ;;  %v247_v31 = vld [vmem:[#allocation7 + $0x2f8] sm:$0xff] }
 0x1c8   :  { %1757 = vmatmul.mubr.bf16.vlgmr.msra.gmra.mxu1 %v2730_v6  ;;  %1810 = vmatmul.mubr.bf16.vlgmr.msra.gmra.mxu0 %v2730_v6  ;;  %v1122_v58 = vpop.f32.mrf.mxu1  ;;  %v1175_v59 = vpop.f32.mrf.mxu0 }
 0x1c9   :  { %1831 = vmatpush1.bf16.msra.mxu1 %v916_v41  ;;  %1884 = vmatpush1.bf16.msra.mxu0 %v918_v42  ;;  %v1123_v0 = vadd.f32 %v1122_v58, %v2800_v45  ;;  %v1176_v9 = vadd.f32 %v1175_v59, %v2804_v52  ;;  %v405_v41 = vld [vmem:[#allocation7 + $0x7e8] sm:$0xff]  ;;  %v375_v42 = vld [vmem:[#allocation7 + $0x6f8] sm:$0xff] }
 0x1ca   :  { %v1124_v1 = vpop.f32.mrf.mxu1  ;;  %v1177_v2 = vpop.f32.mrf.mxu0  ;;  %1832 = vmatprep.subr.bf16.mxu1 %v885_v46  ;;  %1885 = vmatprep.subr.bf16.mxu0 %v887_v48 }
 0x1cb   :  { %v1125_v10 = vadd.f32 %v1124_v1, %v2808_v53  ;;  %v1178_v11 = vadd.f32 %v1177_v2, %v2812_v54  ;;  %1766 = vmatprep.mubr.bf16.mxu1 %v2668_v47  ;;  %1819 = vmatprep.mubr.bf16.mxu0 %v2668_v47 }
 0x1cc   :  { %v1126_v15 = vpop.f32.mrf.mxu1  ;;  %v1179_v16 = vpop.f32.mrf.mxu0 }
 0x1cd   :  { %v2470_v17 = vpack.c.bf16 %v1125_v10, %v1123_v0  ;;  %v2471_v18 = vpack.c.bf16 %v1178_v11, %v1176_v9  ;;  %1833 = vmatpush1.bf16.msra.mxu1 %v884_v60  ;;  %1886 = vmatpush1.bf16.msra.mxu0 %v886_v61  ;;  %v1127_v33 = vadd.f32 %v1126_v15, %v2800_v45  ;;  %v309_v0 = vld [vmem:[#allocation7 + $0x4e8] sm:$0xff] }
 0x1ce   :  { %v1128_v23 = vpop.f32.mrf.mxu1  ;;  %v1181_v24 = vpop.f32.mrf.mxu0  ;;  %1834 = vmatprep.subr.bf16.mxu1 %v853_v3  ;;  %v1180_v38 = vadd.f32 %v1179_v16, %v2804_v52  ;;  %1887 = vmatprep.subr.bf16.mxu0 %v855_v4  ;;  %v789_v60 = vpack.c.bf16 %v405_v41, %v373_v32  ;;  %v791_v61 = vpack.c.bf16 %v407_v43, %v375_v42  ;;  %v341_v4 = vld [vmem:[#allocation7 + $0x5e8] sm:$0xff]  ;;  %v279_v32 = vld [vmem:[#allocation7 + $0x3f8] sm:$0xff]  ;;  %v244_v41 = vld [vmem:[#allocation7 + $0x2e0] sm:$0xff] }
 0x1cf   :  { %2320 = vst [vmem:[#allocation10] sm:$0xff] %v2470_v17  ;;  %2321 = vst [vmem:[#allocation10 + $0x8] sm:$0xff] %v2471_v18  ;;  %v1129_v39 = vadd.f32 %v1128_v23, %v2808_v53  ;;  %v1182_v40 = vadd.f32 %v1181_v24, %v2812_v54  ;;  %v790_v15 = vpack.c.bf16 %v406_v63, %v374_v62  ;;  %v308_v18 = vld [vmem:[#allocation7 + $0x4e0] sm:$0xff]  ;;  %v246_v42 = vld [vmem:[#allocation7 + $0x2f0] sm:$0xff]  ;;  %v2839_v62 = vsub.s32 4, %v2782_v19 }
 0x1d0   :  { %1767 = vmatmul.mubr.bf16.gmra.mxu1 %v2736_v34  ;;  %1820 = vmatmul.mubr.bf16.gmra.mxu0 %v2736_v34  ;;  %v1132_v44 = vpop.f32.mrf.mxu1  ;;  %v1185_v46 = vpop.f32.mrf.mxu0  ;;  %v757_v16 = vpack.c.bf16 %v341_v4, %v309_v0  ;;  %v759_v17 = vpack.c.bf16 %v343_v7, %v311_v5  ;;  %v181_v43 = vld [vmem:[#allocation7 + $0xe8] sm:$0xff]  ;;  %v2842_v63 = vsub.s32 6, %v2782_v19  ;;  %v2845_v0 = vsub.s32 5, %v2782_v19 }
 0x1d1   :  { %v2486_v48 = vpack.c.bf16 %v1129_v39, %v1127_v33  ;;  %v2487_v49 = vpack.c.bf16 %v1182_v40, %v1180_v38  ;;  %1835 = vmatpush1.bf16.msra.mxu1 %v852_v20  ;;  %v1133_v57 = vadd.f32 %v1132_v44, %v2800_v45  ;;  %1888 = vmatpush1.bf16.msra.mxu0 %v854_v26  ;;  %v340_v20 = vld [vmem:[#allocation7 + $0x5e0] sm:$0xff]  ;;  %v213_v44 = vld [vmem:[#allocation7 + $0x1e8] sm:$0xff] }
 0x1d2   :  { %v1134_v58 = vpop.f32.mrf.mxu1  ;;  %v1187_v59 = vpop.f32.mrf.mxu0  ;;  %1836 = vmatprep.subr.bf16.mxu1 %v821_v27  ;;  %v1186_v1 = vadd.f32 %v1185_v46, %v2804_v52  ;;  %1889 = vmatprep.subr.bf16.mxu0 %v823_v28  ;;  %v342_v27 = vld [vmem:[#allocation7 + $0x5f0] sm:$0xff]  ;;  %v245_v28 = vld [vmem:[#allocation7 + $0x2e8] sm:$0xff]  ;;  %v756_v39 = vpack.c.bf16 %v340_v20, %v308_v18  ;;  %v183_v46 = vld [vmem:[#allocation7 + $0xf8] sm:$0xff]  ;;  %v951_v4 = vrot.slane %v2784_v25, %v2845_v0 }
 0x1d3   :  { %2336 = vst [vmem:[#allocation10 + $0x80] sm:$0xff] %v2486_v48  ;;  %2337 = vst [vmem:[#allocation10 + $0x88] sm:$0xff] %v2487_v49  ;;  %v1135_v2 = vadd.f32 %v1134_v58, %v2808_v53  ;;  %v1188_v3 = vadd.f32 %v1187_v59, %v2812_v54  ;;  %1862 = vmatprep.mubr.bf16.mxu1 %v2668_v47  ;;  %1915 = vmatprep.mubr.bf16.mxu0 %v2668_v47  ;;  %v215_v48 = vld [vmem:[#allocation7 + $0x1f8] sm:$0xff]  ;;  %v182_v58 = vld [vmem:[#allocation7 + $0xf0] sm:$0xff] }
 0x1d4   :  { %v1136_v8 = vpop.f32.mrf.mxu1  ;;  %v1189_v9 = vpop.f32.mrf.mxu0  ;;  %v758_v40 = vpack.c.bf16 %v342_v27, %v310_v21  ;;  %v214_v59 = vld [vmem:[#allocation7 + $0x1f0] sm:$0xff] }
 0x1d5   :  { %v2502_v10 = vpack.c.bf16 %v1135_v2, %v1133_v57  ;;  %v2503_v11 = vpack.c.bf16 %v1188_v3, %v1186_v1  ;;  %1837 = vmatpush1.bf16.msra.mxu1 %v820_v50  ;;  %1890 = vmatpush1.bf16.msra.mxu0 %v822_v51  ;;  %v1137_v22 = vadd.f32 %v1136_v8, %v2800_v45  ;;  %v2848_v1 = vsub.s32 7, %v2782_v19 }
 0x1d6   :  { %v1138_v13 = vpop.f32.mrf.mxu1  ;;  %v1191_v14 = vpop.f32.mrf.mxu0  ;;  %1838 = vmatprep.subr.bf16.mxu1 %v789_v60  ;;  %v1190_v23 = vadd.f32 %v1189_v9, %v2804_v52  ;;  %1891 = vmatprep.subr.bf16.mxu0 %v791_v61  ;;  %v725_v45 = vpack.c.bf16 %v277_v29, %v245_v28  ;;  %v276_v52 = vld [vmem:[#allocation7 + $0x3e0] sm:$0xff]  ;;  %v693_v51 = vpack.c.bf16 %v213_v44, %v181_v43 }
 0x1d7   :  { %2352 = vst [vmem:[#allocation10 + $0x100] sm:$0xff] %v2502_v10  ;;  %2353 = vst [vmem:[#allocation10 + $0x108] sm:$0xff] %v2503_v11  ;;  %v1139_v24 = vadd.f32 %v1138_v13, %v2808_v53  ;;  %v1192_v26 = vadd.f32 %v1191_v14, %v2812_v54  ;;  %v727_v53 = vpack.c.bf16 %v279_v32, %v247_v31  ;;  %v278_v54 = vld [vmem:[#allocation7 + $0x3f0] sm:$0xff] }
 0x1d8   :  { %v724_v49 = vpack.c.bf16 %v276_v52, %v244_v41  ;;  %v726_v50 = vpack.c.bf16 %v278_v54, %v246_v42  ;;  %v695_v57 = vpack.c.bf16 %v215_v48, %v183_v46  ;;  %v692_v60 = vpack.c.bf16 %v212_v56, %v180_v55  ;;  %v921_v46 = vld [vmem:[#allocation8 + $0x8] sm:$0xff] }
 0x1d9   :  { %v2518_v33 = vpack.c.bf16 %v1139_v24, %v1137_v22  ;;  %v2519_v38 = vpack.c.bf16 %v1192_v26, %v1190_v23  ;;  %1839 = vmatpush1.bf16.msra.mxu1 %v788_v12  ;;  %1892 = vmatpush1.bf16.msra.mxu0 %v790_v15  ;;  %v694_v61 = vpack.c.bf16 %v214_v59, %v182_v58 }
 0x1da   :  { %1840 = vmatprep.subr.bf16.mxu1 %v757_v16  ;;  %1893 = vmatprep.subr.bf16.mxu0 %v759_v17  ;;  %v947_v2 = vrot.slane %v2784_v25, %v2839_v62  ;;  %v955_v3 = vrot.slane %v2784_v25, %v2842_v63  ;;  %v959_v5 = vrot.slane %v2784_v25, %v2848_v1 }
 0x1db   :  { %2368 = vst [vmem:[#allocation10 + $0x180] sm:$0xff] %v2518_v33  ;;  %2369 = vst [vmem:[#allocation10 + $0x188] sm:$0xff] %v2519_v38  ;;  %v963_v48 = vrot.slane %v921_v46, %v2787_v30 }
 0x1dd   :  { %1841 = vmatpush1.bf16.msra.mxu1 %v756_v39  ;;  %1894 = vmatpush1.bf16.msra.mxu0 %v758_v40 }
 0x1de   :  { %1842 = vmatprep.subr.bf16.mxu1 %v725_v45  ;;  %1895 = vmatprep.subr.bf16.mxu0 %v727_v53 }
 0x1e1   :  { %1843 = vmatpush1.bf16.msra.mxu1 %v724_v49  ;;  %1896 = vmatpush1.bf16.msra.mxu0 %v726_v50  ;;  %v971_v49 = vrot.slane %v921_v46, %v2790_v35  ;;  %v967_v50 = vrot.slane %v921_v46, %v2793_v36 }
 0x1e2   :  { %1844 = vmatprep.subr.bf16.mxu1 %v693_v51  ;;  %1897 = vmatprep.subr.bf16.mxu0 %v695_v57  ;;  %v975_v51 = vrot.slane %v921_v46, %v2796_v37 }
 0x1e5   :  { %1845 = vmatpush1.bf16.msra.mxu1 %v692_v60  ;;  %1898 = vmatpush1.bf16.msra.mxu0 %v694_v61 }
 0x1e8   :  { %v1228_v7 = vpop.f32.mrf.mxu1  ;;  %v1281_v8 = vpop.f32.mrf.mxu0  ;;  %1863 = vmatmul.mubr.bf16.vlgmr.msra.gmra.mxu1 %v2730_v6  ;;  %1916 = vmatmul.mubr.bf16.vlgmr.msra.gmra.mxu0 %v2730_v6 }
 0x1e9   :  { %1872 = vmatprep.mubr.bf16.mxu1 %v2668_v47  ;;  %1925 = vmatprep.mubr.bf16.mxu0 %v2668_v47  ;;  %v1229_v10 = vadd.f32 %v1228_v7, %v947_v2  ;;  %v1282_v11 = vadd.f32 %v1281_v8, %v955_v3 }
 0x1ea   :  { %v1230_v19 = vpop.f32.mrf.mxu1  ;;  %v1283_v9 = vpop.f32.mrf.mxu0 }
 0x1eb   :  { %v1231_v12 = vadd.f32 %v1230_v19, %v951_v4  ;;  %v1284_v13 = vadd.f32 %v1283_v9, %v959_v5 }
 0x1ec   :  { %v1232_v14 = vpop.f32.mrf.mxu1  ;;  %v1285_v15 = vpop.f32.mrf.mxu0 }
 0x1ed   :  { %v2472_v16 = vpack.c.bf16 %v1231_v12, %v1229_v10  ;;  %v2473_v25 = vpack.c.bf16 %v1284_v13, %v1282_v11  ;;  %v1233_v20 = vadd.f32 %v1232_v14, %v947_v2  ;;  %v1286_v6 = vadd.f32 %v1285_v15, %v955_v3 }
 0x1ee   :  { %v1234_v17 = vpop.f32.mrf.mxu1  ;;  %v1287_v18 = vpop.f32.mrf.mxu0 }
 0x1ef   :  { %2322 = vst [vmem:[#allocation10 + $0x10] sm:$0xff] %v2472_v16  ;;  %2323 = vst [vmem:[#allocation10 + $0x18] sm:$0xff] %v2473_v25  ;;  %v1235_v21 = vadd.f32 %v1234_v17, %v951_v4  ;;  %v1288_v22 = vadd.f32 %v1287_v18, %v959_v5 }
 0x1f0   :  { %v1238_v23 = vpop.f32.mrf.mxu1  ;;  %v1291_v24 = vpop.f32.mrf.mxu0  ;;  %1873 = vmatmul.mubr.bf16.gmra.mxu1 %v2736_v34  ;;  %1926 = vmatmul.mubr.bf16.gmra.mxu0 %v2736_v34 }
 0x1f1   :  { %v2488_v47 = vpack.c.bf16 %v1235_v21, %v1233_v20  ;;  %v2489_v26 = vpack.c.bf16 %v1288_v22, %v1286_v6  ;;  %v1239_v29 = vadd.f32 %v1238_v23, %v947_v2  ;;  %v1292_v31 = vadd.f32 %v1291_v24, %v955_v3 }
 0x1f2   :  { %v1240_v27 = vpop.f32.mrf.mxu1  ;;  %v1293_v28 = vpop.f32.mrf.mxu0 }
 0x1f3   :  { %2338 = vst [vmem:[#allocation10 + $0x90] sm:$0xff] %v2488_v47  ;;  %2339 = vst [vmem:[#allocation10 + $0x98] sm:$0xff] %v2489_v26  ;;  %v1241_v32 = vadd.f32 %v1240_v27, %v951_v4  ;;  %v1294_v33 = vadd.f32 %v1293_v28, %v959_v5 }
 0x1f4   :  { %v1242_v38 = vpop.f32.mrf.mxu1  ;;  %v1295_v39 = vpop.f32.mrf.mxu0 }
 0x1f5   :  { %v2504_v40 = vpack.c.bf16 %v1241_v32, %v1239_v29  ;;  %v2505_v45 = vpack.c.bf16 %v1294_v33, %v1292_v31  ;;  %v1243_v42 = vadd.f32 %v1242_v38, %v947_v2  ;;  %v1296_v53 = vadd.f32 %v1295_v39, %v955_v3 }
 0x1f6   :  { %v1244_v41 = vpop.f32.mrf.mxu1  ;;  %v1297_v52 = vpop.f32.mrf.mxu0  ;;  %v979_v39 = vrot.slane %v921_v46, %v2839_v62 }
 0x1f7   :  { %2354 = vst [vmem:[#allocation10 + $0x110] sm:$0xff] %v2504_v40  ;;  %2355 = vst [vmem:[#allocation10 + $0x118] sm:$0xff] %v2505_v45  ;;  %v1245_v54 = vadd.f32 %v1244_v41, %v951_v4  ;;  %v1298_v34 = vadd.f32 %v1297_v52, %v959_v5  ;;  %v987_v40 = vrot.slane %v921_v46, %v2842_v63 }
 0x1f8   :  { %v983_v45 = vrot.slane %v921_v46, %v2845_v0  ;;  %v991_v41 = vrot.slane %v921_v46, %v2848_v1 }
 0x1f9   :  { %v2520_v43 = vpack.c.bf16 %v1245_v54, %v1243_v42  ;;  %v2521_v44 = vpack.c.bf16 %v1298_v34, %v1296_v53 }
 0x1fb   :  { %2370 = vst [vmem:[#allocation10 + $0x190] sm:$0xff] %v2520_v43  ;;  %2371 = vst [vmem:[#allocation10 + $0x198] sm:$0xff] %v2521_v44 }
 0x208   :  { %v1334_v55 = vpop.f32.mrf.mxu1  ;;  %v1387_v56 = vpop.f32.mrf.mxu0 }
 0x209   :  { %v1335_v59 = vadd.f32 %v1334_v55, %v963_v48  ;;  %v1388_v60 = vadd.f32 %v1387_v56, %v971_v49 }
 0x20a   :  { %v1336_v57 = vpop.f32.mrf.mxu1  ;;  %v1389_v58 = vpop.f32.mrf.mxu0 }
 0x20b   :  { %v1337_v61 = vadd.f32 %v1336_v57, %v967_v50  ;;  %v1390_v2 = vadd.f32 %v1389_v58, %v975_v51 }
 0x20c   :  { %v1338_v3 = vpop.f32.mrf.mxu1  ;;  %v1391_v4 = vpop.f32.mrf.mxu0 }
 0x20d   :  { %v2474_v5 = vpack.c.bf16 %v1337_v61, %v1335_v59  ;;  %v2475_v7 = vpack.c.bf16 %v1390_v2, %v1388_v60  ;;  %v1339_v9 = vadd.f32 %v1338_v3, %v963_v48  ;;  %v1392_v10 = vadd.f32 %v1391_v4, %v971_v49 }
 0x20e   :  { %v1340_v8 = vpop.f32.mrf.mxu1  ;;  %v1393_v19 = vpop.f32.mrf.mxu0 }
 0x20f   :  { %2324 = vst [vmem:[#allocation10 + $0x20] sm:$0xff] %v2474_v5  ;;  %2325 = vst [vmem:[#allocation10 + $0x28] sm:$0xff] %v2475_v7  ;;  %v1341_v11 = vadd.f32 %v1340_v8, %v967_v50  ;;  %v1394_v12 = vadd.f32 %v1393_v19, %v975_v51 }
 0x210   :  { %v1344_v13 = vpop.f32.mrf.mxu1  ;;  %v1397_v14 = vpop.f32.mrf.mxu0 }
 0x211   :  { %v2490_v15 = vpack.c.bf16 %v1341_v11, %v1339_v9  ;;  %v2491_v16 = vpack.c.bf16 %v1394_v12, %v1392_v10  ;;  %v1345_v18 = vadd.f32 %v1344_v13, %v963_v48  ;;  %v1398_v20 = vadd.f32 %v1397_v14, %v971_v49 }
 0x212   :  { %v1346_v25 = vpop.f32.mrf.mxu1  ;;  %v1399_v17 = vpop.f32.mrf.mxu0 }
 0x213   :  { %2340 = vst [vmem:[#allocation10 + $0xa0] sm:$0xff] %v2490_v15  ;;  %2341 = vst [vmem:[#allocation10 + $0xa8] sm:$0xff] %v2491_v16  ;;  %v1347_v6 = vadd.f32 %v1346_v25, %v967_v50  ;;  %v1400_v21 = vadd.f32 %v1399_v17, %v975_v51 }
 0x214   :  { %v1348_v22 = vpop.f32.mrf.mxu1  ;;  %v1401_v23 = vpop.f32.mrf.mxu0 }
 0x215   :  { %v2506_v24 = vpack.c.bf16 %v1347_v6, %v1345_v18  ;;  %v2507_v47 = vpack.c.bf16 %v1400_v21, %v1398_v20  ;;  %v1349_v28 = vadd.f32 %v1348_v22, %v963_v48  ;;  %v1402_v29 = vadd.f32 %v1401_v23, %v971_v49  ;;  %v922_v22 = vld [vmem:[#allocation8 + $0x10] sm:$0xff] }
 0x216   :  { %v1350_v26 = vpop.f32.mrf.mxu1  ;;  %v1403_v27 = vpop.f32.mrf.mxu0  ;;  %v995_v23 = vrot.slane %v922_v22, %v2787_v30 }
 0x217   :  { %2356 = vst [vmem:[#allocation10 + $0x120] sm:$0xff] %v2506_v24  ;;  %2357 = vst [vmem:[#allocation10 + $0x128] sm:$0xff] %v2507_v47  ;;  %v1351_v31 = vadd.f32 %v1350_v26, %v967_v50  ;;  %v1404_v32 = vadd.f32 %v1403_v27, %v975_v51  ;;  %v1003_v24 = vrot.slane %v922_v22, %v2790_v35 }
 0x218   :  { %v999_v47 = vrot.slane %v922_v22, %v2793_v36  ;;  %v1007_v26 = vrot.slane %v922_v22, %v2796_v37 }
 0x219   :  { %v2522_v33 = vpack.c.bf16 %v1351_v31, %v1349_v28  ;;  %v2523_v38 = vpack.c.bf16 %v1404_v32, %v1402_v29 }
 0x21b   :  { %2372 = vst [vmem:[#allocation10 + $0x1a0] sm:$0xff] %v2522_v33  ;;  %2373 = vst [vmem:[#allocation10 + $0x1a8] sm:$0xff] %v2523_v38 }
 0x228   :  { %v1440_v52 = vpop.f32.mrf.mxu1  ;;  %v1493_v42 = vpop.f32.mrf.mxu0 }
 0x229   :  { %v1441_v34 = vadd.f32 %v1440_v52, %v979_v39  ;;  %v1494_v43 = vadd.f32 %v1493_v42, %v987_v40 }
 0x22a   :  { %v1442_v53 = vpop.f32.mrf.mxu1  ;;  %v1495_v54 = vpop.f32.mrf.mxu0 }
 0x22b   :  { %v1443_v44 = vadd.f32 %v1442_v53, %v983_v45  ;;  %v1496_v48 = vadd.f32 %v1495_v54, %v991_v41 }
 0x22c   :  { %v1444_v49 = vpop.f32.mrf.mxu1  ;;  %v1497_v50 = vpop.f32.mrf.mxu0 }
 0x22d   :  { %v2476_v51 = vpack.c.bf16 %v1443_v44, %v1441_v34  ;;  %v2477_v55 = vpack.c.bf16 %v1496_v48, %v1494_v43  ;;  %v1445_v58 = vadd.f32 %v1444_v49, %v979_v39  ;;  %v1498_v59 = vadd.f32 %v1497_v50, %v987_v40 }
 0x22e   :  { %v1446_v56 = vpop.f32.mrf.mxu1  ;;  %v1499_v57 = vpop.f32.mrf.mxu0 }
 0x22f   :  { %2326 = vst [vmem:[#allocation10 + $0x30] sm:$0xff] %v2476_v51  ;;  %2327 = vst [vmem:[#allocation10 + $0x38] sm:$0xff] %v2477_v55  ;;  %v1447_v60 = vadd.f32 %v1446_v56, %v983_v45  ;;  %v1500_v46 = vadd.f32 %v1499_v57, %v991_v41 }
 0x230   :  { %v1450_v61 = vpop.f32.mrf.mxu1  ;;  %v1503_v2 = vpop.f32.mrf.mxu0 }
 0x231   :  { %v2492_v3 = vpack.c.bf16 %v1447_v60, %v1445_v58  ;;  %v2493_v4 = vpack.c.bf16 %v1500_v46, %v1498_v59  ;;  %v1451_v8 = vadd.f32 %v1450_v61, %v979_v39  ;;  %v1504_v19 = vadd.f32 %v1503_v2, %v987_v40 }
 0x232   :  { %v1452_v5 = vpop.f32.mrf.mxu1  ;;  %v1505_v7 = vpop.f32.mrf.mxu0 }
 0x233   :  { %2342 = vst [vmem:[#allocation10 + $0xb0] sm:$0xff] %v2492_v3  ;;  %2343 = vst [vmem:[#allocation10 + $0xb8] sm:$0xff] %v2493_v4  ;;  %v1453_v9 = vadd.f32 %v1452_v5, %v983_v45  ;;  %v1506_v10 = vadd.f32 %v1505_v7, %v991_v41 }
 0x234   :  { %v1454_v11 = vpop.f32.mrf.mxu1  ;;  %v1507_v12 = vpop.f32.mrf.mxu0 }
 0x235   :  { %v2508_v13 = vpack.c.bf16 %v1453_v9, %v1451_v8  ;;  %v2509_v14 = vpack.c.bf16 %v1506_v10, %v1504_v19  ;;  %v1455_v25 = vadd.f32 %v1454_v11, %v979_v39  ;;  %v1508_v17 = vadd.f32 %v1507_v12, %v987_v40 }
 0x236   :  { %v1456_v15 = vpop.f32.mrf.mxu1  ;;  %v1509_v16 = vpop.f32.mrf.mxu0  ;;  %v1011_v12 = vrot.slane %v922_v22, %v2839_v62 }
 0x237   :  { %2358 = vst [vmem:[#allocation10 + $0x130] sm:$0xff] %v2508_v13  ;;  %2359 = vst [vmem:[#allocation10 + $0x138] sm:$0xff] %v2509_v14  ;;  %v1457_v18 = vadd.f32 %v1456_v15, %v983_v45  ;;  %v1510_v20 = vadd.f32 %v1509_v16, %v991_v41  ;;  %v1019_v13 = vrot.slane %v922_v22, %v2842_v63 }
 0x238   :  { %v1015_v14 = vrot.slane %v922_v22, %v2845_v0  ;;  %v1023_v15 = vrot.slane %v922_v22, %v2848_v1 }
 0x239   :  { %v2524_v6 = vpack.c.bf16 %v1457_v18, %v1455_v25  ;;  %v2525_v21 = vpack.c.bf16 %v1510_v20, %v1508_v17 }
 0x23b   :  { %2374 = vst [vmem:[#allocation10 + $0x1b0] sm:$0xff] %v2524_v6  ;;  %2375 = vst [vmem:[#allocation10 + $0x1b8] sm:$0xff] %v2525_v21 }
 0x248   :  { %v1546_v27 = vpop.f32.mrf.mxu1  ;;  %v1599_v28 = vpop.f32.mrf.mxu0 }
 0x249   :  { %v1547_v32 = vadd.f32 %v1546_v27, %v995_v23  ;;  %v1600_v33 = vadd.f32 %v1599_v28, %v1003_v24 }
 0x24a   :  { %v1548_v29 = vpop.f32.mrf.mxu1  ;;  %v1601_v31 = vpop.f32.mrf.mxu0 }
 0x24b   :  { %v1549_v38 = vadd.f32 %v1548_v29, %v999_v47  ;;  %v1602_v39 = vadd.f32 %v1601_v31, %v1007_v26 }
 0x24c   :  { %v1550_v40 = vpop.f32.mrf.mxu1  ;;  %v1603_v45 = vpop.f32.mrf.mxu0 }
 0x24d   :  { %v2478_v41 = vpack.c.bf16 %v1549_v38, %v1547_v32  ;;  %v2479_v52 = vpack.c.bf16 %v1602_v39, %v1600_v33  ;;  %v1551_v54 = vadd.f32 %v1550_v40, %v995_v23  ;;  %v1604_v34 = vadd.f32 %v1603_v45, %v1003_v24 }
 0x24e   :  { %v1552_v42 = vpop.f32.mrf.mxu1  ;;  %v1605_v53 = vpop.f32.mrf.mxu0 }
 0x24f   :  { %2328 = vst [vmem:[#allocation10 + $0x40] sm:$0xff] %v2478_v41  ;;  %2329 = vst [vmem:[#allocation10 + $0x48] sm:$0xff] %v2479_v52  ;;  %v1553_v43 = vadd.f32 %v1552_v42, %v999_v47  ;;  %v1606_v44 = vadd.f32 %v1605_v53, %v1007_v26 }
 0x250   :  { %v1556_v48 = vpop.f32.mrf.mxu1  ;;  %v1609_v49 = vpop.f32.mrf.mxu0 }
 0x251   :  { %v2494_v50 = vpack.c.bf16 %v1553_v43, %v1551_v54  ;;  %v2495_v51 = vpack.c.bf16 %v1606_v44, %v1604_v34  ;;  %v1557_v57 = vadd.f32 %v1556_v48, %v995_v23  ;;  %v1610_v58 = vadd.f32 %v1609_v49, %v1003_v24 }
 0x252   :  { %v1558_v55 = vpop.f32.mrf.mxu1  ;;  %v1611_v56 = vpop.f32.mrf.mxu0 }
 0x253   :  { %2344 = vst [vmem:[#allocation10 + $0xc0] sm:$0xff] %v2494_v50  ;;  %2345 = vst [vmem:[#allocation10 + $0xc8] sm:$0xff] %v2495_v51  ;;  %v1559_v59 = vadd.f32 %v1558_v55, %v999_v47  ;;  %v1612_v60 = vadd.f32 %v1611_v56, %v1007_v26 }
 0x254   :  { %v1560_v46 = vpop.f32.mrf.mxu1  ;;  %v1613_v61 = vpop.f32.mrf.mxu0 }
 0x255   :  { %v2510_v2 = vpack.c.bf16 %v1559_v59, %v1557_v57  ;;  %v2511_v3 = vpack.c.bf16 %v1612_v60, %v1610_v58  ;;  %v1561_v7 = vadd.f32 %v1560_v46, %v995_v23  ;;  %v1614_v8 = vadd.f32 %v1613_v61, %v1003_v24  ;;  %v923_v46 = vld [vmem:[#allocation8 + $0x18] sm:$0xff] }
 0x256   :  { %v1562_v4 = vpop.f32.mrf.mxu1  ;;  %v1615_v5 = vpop.f32.mrf.mxu0  ;;  %v1027_v61 = vrot.slane %v923_v46, %v2787_v30 }
 0x257   :  { %2360 = vst [vmem:[#allocation10 + $0x140] sm:$0xff] %v2510_v2  ;;  %2361 = vst [vmem:[#allocation10 + $0x148] sm:$0xff] %v2511_v3  ;;  %v1563_v19 = vadd.f32 %v1562_v4, %v999_v47  ;;  %v1616_v9 = vadd.f32 %v1615_v5, %v1007_v26  ;;  %v1035_v2 = vrot.slane %v923_v46, %v2790_v35 }
 0x258   :  { %v1031_v3 = vrot.slane %v923_v46, %v2793_v36  ;;  %v1039_v4 = vrot.slane %v923_v46, %v2796_v37 }
 0x259   :  { %v2526_v10 = vpack.c.bf16 %v1563_v19, %v1561_v7  ;;  %v2527_v11 = vpack.c.bf16 %v1616_v9, %v1614_v8 }
 0x25b   :  { %2376 = vst [vmem:[#allocation10 + $0x1c0] sm:$0xff] %v2526_v10  ;;  %2377 = vst [vmem:[#allocation10 + $0x1c8] sm:$0xff] %v2527_v11 }
 0x268   :  { %v1652_v16 = vpop.f32.mrf.mxu1  ;;  %v1705_v25 = vpop.f32.mrf.mxu0 }
 0x269   :  { %v1653_v20 = vadd.f32 %v1652_v16, %v1011_v12  ;;  %v1706_v6 = vadd.f32 %v1705_v25, %v1019_v13 }
 0x26a   :  { %v1654_v17 = vpop.f32.mrf.mxu1  ;;  %v1707_v18 = vpop.f32.mrf.mxu0 }
 0x26b   :  { %v1655_v21 = vadd.f32 %v1654_v17, %v1015_v14  ;;  %v1708_v23 = vadd.f32 %v1707_v18, %v1023_v15 }
 0x26c   :  { %v1656_v24 = vpop.f32.mrf.mxu1  ;;  %v1709_v47 = vpop.f32.mrf.mxu0 }
 0x26d   :  { %v2480_v26 = vpack.c.bf16 %v1655_v21, %v1653_v20  ;;  %v2481_v27 = vpack.c.bf16 %v1708_v23, %v1706_v6  ;;  %v1657_v31 = vadd.f32 %v1656_v24, %v1011_v12  ;;  %v1710_v32 = vadd.f32 %v1709_v47, %v1019_v13 }
 0x26e   :  { %v1658_v28 = vpop.f32.mrf.mxu1  ;;  %v1711_v29 = vpop.f32.mrf.mxu0 }
 0x26f   :  { %2330 = vst [vmem:[#allocation10 + $0x50] sm:$0xff] %v2480_v26  ;;  %2331 = vst [vmem:[#allocation10 + $0x58] sm:$0xff] %v2481_v27  ;;  %v1659_v33 = vadd.f32 %v1658_v28, %v1015_v14  ;;  %v1712_v22 = vadd.f32 %v1711_v29, %v1023_v15 }
 0x270   :  { %v1662_v38 = vpop.f32.mrf.mxu1  ;;  %v1715_v39 = vpop.f32.mrf.mxu0 }
 0x271   :  { %v2496_v40 = vpack.c.bf16 %v1659_v33, %v1657_v31  ;;  %v2497_v45 = vpack.c.bf16 %v1712_v22, %v1710_v32  ;;  %v1663_v42 = vadd.f32 %v1662_v38, %v1011_v12  ;;  %v1716_v53 = vadd.f32 %v1715_v39, %v1019_v13 }
 0x272   :  { %v1664_v41 = vpop.f32.mrf.mxu1  ;;  %v1717_v52 = vpop.f32.mrf.mxu0 }
 0x273   :  { %2346 = vst [vmem:[#allocation10 + $0xd0] sm:$0xff] %v2496_v40  ;;  %2347 = vst [vmem:[#allocation10 + $0xd8] sm:$0xff] %v2497_v45  ;;  %v1665_v54 = vadd.f32 %v1664_v41, %v1015_v14  ;;  %v1718_v34 = vadd.f32 %v1717_v52, %v1023_v15 }
 0x274   :  { %v1666_v43 = vpop.f32.mrf.mxu1  ;;  %v1719_v44 = vpop.f32.mrf.mxu0 }
 0x275   :  { %v2512_v48 = vpack.c.bf16 %v1665_v54, %v1663_v42  ;;  %v2513_v49 = vpack.c.bf16 %v1718_v34, %v1716_v53  ;;  %v1667_v55 = vadd.f32 %v1666_v43, %v1011_v12  ;;  %v1720_v56 = vadd.f32 %v1719_v44, %v1019_v13 }
 0x276   :  { %v1668_v50 = vpop.f32.mrf.mxu1  ;;  %v1721_v51 = vpop.f32.mrf.mxu0  ;;  %v1043_v53 = vrot.slane %v923_v46, %v2839_v62  ;;  %v1047_v54 = vrot.slane %v923_v46, %v2845_v0  ;;  %v1051_v43 = vrot.slane %v923_v46, %v2842_v63  ;;  %v1055_v44 = vrot.slane %v923_v46, %v2848_v1 }
 0x277   :  { %2362 = vst [vmem:[#allocation10 + $0x150] sm:$0xff] %v2512_v48  ;;  %2363 = vst [vmem:[#allocation10 + $0x158] sm:$0xff] %v2513_v49  ;;  %v1669_v57 = vadd.f32 %v1668_v50, %v1015_v14  ;;  %v1722_v58 = vadd.f32 %v1721_v51, %v1023_v15 }
 0x279   :  { %v2528_v59 = vpack.c.bf16 %v1669_v57, %v1667_v55  ;;  %v2529_v60 = vpack.c.bf16 %v1722_v58, %v1720_v56 }
 0x27b   :  { %2378 = vst [vmem:[#allocation10 + $0x1d0] sm:$0xff] %v2528_v59  ;;  %2379 = vst [vmem:[#allocation10 + $0x1d8] sm:$0xff] %v2529_v60 }
 0x288   :  { %v1758_v5 = vpop.f32.mrf.mxu1  ;;  %v1811_v7 = vpop.f32.mrf.mxu0 }
 0x289   :  { %v1759_v9 = vadd.f32 %v1758_v5, %v1027_v61  ;;  %v1812_v10 = vadd.f32 %v1811_v7, %v1035_v2 }
 0x28a   :  { %v1760_v8 = vpop.f32.mrf.mxu1  ;;  %v1813_v19 = vpop.f32.mrf.mxu0 }
 0x28b   :  { %v1761_v11 = vadd.f32 %v1760_v8, %v1031_v3  ;;  %v1814_v12 = vadd.f32 %v1813_v19, %v1039_v4 }
 0x28c   :  { %v1762_v13 = vpop.f32.mrf.mxu1  ;;  %v1815_v14 = vpop.f32.mrf.mxu0 }
 0x28d   :  { %v2482_v15 = vpack.c.bf16 %v1761_v11, %v1759_v9  ;;  %v2483_v16 = vpack.c.bf16 %v1814_v12, %v1812_v10  ;;  %v1763_v35 = vadd.f32 %v1762_v13, %v1027_v61  ;;  %v1816_v36 = vadd.f32 %v1815_v14, %v1035_v2 }
 0x28e   :  { %v1764_v25 = vpop.f32.mrf.mxu1  ;;  %v1817_v30 = vpop.f32.mrf.mxu0 }
 0x28f   :  { %2332 = vst [vmem:[#allocation10 + $0x60] sm:$0xff] %v2482_v15  ;;  %2333 = vst [vmem:[#allocation10 + $0x68] sm:$0xff] %v2483_v16  ;;  %v1765_v17 = vadd.f32 %v1764_v25, %v1031_v3  ;;  %v1818_v37 = vadd.f32 %v1817_v30, %v1039_v4 }
 0x290   :  { %v1768_v18 = vpop.f32.mrf.mxu1  ;;  %v1821_v20 = vpop.f32.mrf.mxu0 }
 0x291   :  { %v2498_v6 = vpack.c.bf16 %v1765_v17, %v1763_v35  ;;  %v2499_v21 = vpack.c.bf16 %v1818_v37, %v1816_v36  ;;  %v1769_v47 = vadd.f32 %v1768_v18, %v1027_v61  ;;  %v1822_v26 = vadd.f32 %v1821_v20, %v1035_v2 }
 0x292   :  { %v1770_v23 = vpop.f32.mrf.mxu1  ;;  %v1823_v24 = vpop.f32.mrf.mxu0 }
 0x293   :  { %2348 = vst [vmem:[#allocation10 + $0xe0] sm:$0xff] %v2498_v6  ;;  %2349 = vst [vmem:[#allocation10 + $0xe8] sm:$0xff] %v2499_v21  ;;  %v1771_v27 = vadd.f32 %v1770_v23, %v1031_v3  ;;  %v1824_v28 = vadd.f32 %v1823_v24, %v1039_v4 }
 0x294   :  { %v1772_v29 = vpop.f32.mrf.mxu1  ;;  %v1825_v31 = vpop.f32.mrf.mxu0 }
 0x295   :  { %v2514_v32 = vpack.c.bf16 %v1771_v27, %v1769_v47  ;;  %v2515_v33 = vpack.c.bf16 %v1824_v28, %v1822_v26  ;;  %v1773_v39 = vadd.f32 %v1772_v29, %v1027_v61  ;;  %v1826_v40 = vadd.f32 %v1825_v31, %v1035_v2 }
 0x296   :  { %v1774_v22 = vpop.f32.mrf.mxu1  ;;  %v1827_v38 = vpop.f32.mrf.mxu0 }
 0x297   :  { %2364 = vst [vmem:[#allocation10 + $0x160] sm:$0xff] %v2514_v32  ;;  %2365 = vst [vmem:[#allocation10 + $0x168] sm:$0xff] %v2515_v33  ;;  %v1775_v45 = vadd.f32 %v1774_v22, %v1031_v3  ;;  %v1828_v41 = vadd.f32 %v1827_v38, %v1039_v4 }
 0x299   :  { %v2530_v52 = vpack.c.bf16 %v1775_v45, %v1773_v39  ;;  %v2531_v42 = vpack.c.bf16 %v1828_v41, %v1826_v40 }
 0x29b   :  { %2380 = vst [vmem:[#allocation10 + $0x1e0] sm:$0xff] %v2530_v52  ;;  %2381 = vst [vmem:[#allocation10 + $0x1e8] sm:$0xff] %v2531_v42 }
 0x2a8   :  { %v1864_v34 = vpop.f32.mrf.mxu1  ;;  %v1917_v48 = vpop.f32.mrf.mxu0 }
 0x2a9   :  { %v1865_v50 = vadd.f32 %v1864_v34, %v1043_v53  ;;  %v1918_v56 = vadd.f32 %v1917_v48, %v1051_v43 }
 0x2aa   :  { %v1866_v49 = vpop.f32.mrf.mxu1  ;;  %v1919_v55 = vpop.f32.mrf.mxu0 }
 0x2ab   :  { %v1867_v51 = vadd.f32 %v1866_v49, %v1047_v54  ;;  %v1920_v57 = vadd.f32 %v1919_v55, %v1055_v44 }
 0x2ac   :  { %v1868_v58 = vpop.f32.mrf.mxu1  ;;  %v1921_v60 = vpop.f32.mrf.mxu0 }
 0x2ad   :  { %v2484_v59 = vpack.c.bf16 %v1867_v51, %v1865_v50  ;;  %v2485_v61 = vpack.c.bf16 %v1920_v57, %v1918_v56  ;;  %v1869_v62 = vadd.f32 %v1868_v58, %v1043_v53  ;;  %v1922_v63 = vadd.f32 %v1921_v60, %v1051_v43 }
 0x2ae   :  { %v1870_v2 = vpop.f32.mrf.mxu1  ;;  %v1923_v3 = vpop.f32.mrf.mxu0 }
 0x2af   :  { %2334 = vst [vmem:[#allocation10 + $0x70] sm:$0xff] %v2484_v59  ;;  %v1871_v0 = vadd.f32 %v1870_v2, %v1047_v54  ;;  %2335 = vst [vmem:[#allocation10 + $0x78] sm:$0xff] %v2485_v61  ;;  %v1924_v4 = vadd.f32 %v1923_v3, %v1055_v44 }
 0x2b0   :  { %v1874_v1 = vpop.f32.mrf.mxu1  ;;  %v1927_v5 = vpop.f32.mrf.mxu0 }
 0x2b1   :  { %v2500_v46 = vpack.c.bf16 %v1871_v0, %v1869_v62  ;;  %v2501_v7 = vpack.c.bf16 %v1924_v4, %v1922_v63  ;;  %v1875_v19 = vadd.f32 %v1874_v1, %v1043_v53  ;;  %v1928_v11 = vadd.f32 %v1927_v5, %v1051_v43 }
 0x2b2   :  { %v1876_v8 = vpop.f32.mrf.mxu1  ;;  %v1929_v10 = vpop.f32.mrf.mxu0 }
 0x2b3   :  { %2350 = vst [vmem:[#allocation10 + $0xf0] sm:$0xff] %v2500_v46  ;;  %v1877_v9 = vadd.f32 %v1876_v8, %v1047_v54  ;;  %2351 = vst [vmem:[#allocation10 + $0xf8] sm:$0xff] %v2501_v7  ;;  %v1930_v12 = vadd.f32 %v1929_v10, %v1055_v44 }
 0x2b4   :  { %v1878_v13 = vpop.f32.mrf.mxu1  ;;  %v1931_v15 = vpop.f32.mrf.mxu0 }
 0x2b5   :  { %v2516_v14 = vpack.c.bf16 %v1877_v9, %v1875_v19  ;;  %v2517_v16 = vpack.c.bf16 %v1930_v12, %v1928_v11  ;;  %v1879_v30 = vadd.f32 %v1878_v13, %v1043_v53  ;;  %v1932_v17 = vadd.f32 %v1931_v15, %v1051_v43 }
 0x2b6   :  { %v1880_v25 = vpop.f32.mrf.mxu1  ;;  %v1933_v36 = vpop.f32.mrf.mxu0 }
 0x2b7   :  { %2366 = vst [vmem:[#allocation10 + $0x170] sm:$0xff] %v2516_v14  ;;  %v1881_v35 = vadd.f32 %v1880_v25, %v1047_v54  ;;  %2367 = vst [vmem:[#allocation10 + $0x178] sm:$0xff] %v2517_v16  ;;  %v1934_v37 = vadd.f32 %v1933_v36, %v1055_v44 }
 0x2b9   :  { %v2532_v18 = vpack.c.bf16 %v1881_v35, %v1879_v30  ;;  %v2533_v20 = vpack.c.bf16 %v1934_v37, %v1932_v17 }
 0x2bb   :  { %2382 = vst [vmem:[#allocation10 + $0x1f0] sm:$0xff] %v2532_v18  ;;  %2383 = vst [vmem:[#allocation10 + $0x1f8] sm:$0xff] %v2533_v20 }
 0x2bc   :  { %2645 = shalt.err (!%p2642_p10)
}
 0x2bd   :  { %s2670_s22 = smov 2048   ;;  %s2671_s23 = smov 128  }
 0x2be   :  { %2395 = dma.vmem_to_hbm [thread:$0]  %s2390_s20, 8192, %s2896_s5, [#allocation4], %s2670_s22, %s2670_s22, %s2671_s23  }
 0x2bf   :  { %2660 = dma.done.wait [#allocation4], 8192  }
 0x2c0   :  { %2661 = vsyncadd [#allocation4], 4294959104 }
 0x2c1   :  { %2399 = vsyncpa [#allocation3], 1 }
 0x2c2   :  { %2400 = vsyncpa [#allocation6], 1 }
 0x2c3   :  { %2401 = vsyncpa [#allocation9], 1 }
 0x2c4   :  { %2402 = vsyncpa [#allocation4], 1 }

</bundles_post_ra>
